<compile_context>
chip_gen: v6e
topology: v6e:2x2x1
jax: 0.10.0
libtpu: 0.0.40
codegen_flags: <defaults>
</compile_context>

<pallas_src>
import functools
import math

import jax
import jax.numpy as jnp
from jax.experimental import pallas as pl
from jax.experimental.pallas import tpu as pltpu


# ----------------------------- Pallas kernels ------------------------------

def _layernorm_kernel(x_ref, g_ref, b_ref, o_ref, *, eps):
    x = x_ref[...].astype(jnp.float32)                # (tm, D) -> f32 for LN math
    d = x.shape[-1]
    mean = jnp.mean(x, axis=-1, keepdims=True)
    diff = x - mean
    # Unbiased std (ddof=1), eps added to std -- matches torch reference exactly.
    var = jnp.sum(diff * diff, axis=-1, keepdims=True) / (d - 1)
    inv = pl.reciprocal(jnp.sqrt(var) + eps, approx=False)     # exact
    o_ref[...] = (g_ref[...] * diff * inv + b_ref[...]).astype(o_ref.dtype)


def _fused_sublayer_ffn_kernel(x_ref, g_ref, b_ref, w1_ref, b1_ref,
                               w2_ref, b2_ref, o_ref, *, eps):
    """out = x + (relu(LN(x) @ W1 + b1) @ W2 + b2)   (dropout = identity)."""
    x = x_ref[...].astype(jnp.float32)                # (tm, D) f32 working copy
    d = x.shape[-1]

    # --- LayerNorm (f32, unbiased std, eps on std) ---
    mean = jnp.mean(x, axis=-1, keepdims=True)
    diff = x - mean
    var = jnp.sum(diff * diff, axis=-1, keepdims=True) / (d - 1)
    inv = pl.reciprocal(jnp.sqrt(var) + eps, approx=False)
    xn = g_ref[...] * diff * inv + b_ref[...]         # (tm, D) f32

    # --- FFN sublayer: bf16 MXU inputs, f32 accumulate, f32 epilogue ---
    h = jnp.dot(xn.astype(jnp.bfloat16), w1_ref[...],
                preferred_element_type=jnp.float32) + b1_ref[...]
    h = jnp.maximum(h, 0.0)                           # ReLU (f32)
    y = jnp.dot(h.astype(jnp.bfloat16), w2_ref[...],
                preferred_element_type=jnp.float32) + b2_ref[...]

    # --- residual add fused into the epilogue (dropout is identity in eval) ---
    o_ref[...] = (x + y).astype(o_ref.dtype)


# --------------------------- hardware-aware knobs ---------------------------

def _device_kind():
    try:
        return jax.devices()[0].device_kind.lower()
    except Exception:
        return ""


def _num_tensorcores():
    """TensorCores sharing this kernel's grid (for dimension_semantics sharding)."""
    kind = _device_kind()
    # Single-TensorCore generations: v5e / v6e ("lite" chips).
    if any(s in kind for s in ("v5 lite", "v5e", "v5litepod", "v6 lite", "v6e")):
        return 1
    # v7x (2 TCs/chip), v4/v5p megacore, etc.
    return 2


def _vmem_limit_bytes():
    kind = _device_kind()
    if "v7" in kind:
        return 48 * 1024 * 1024    # v7x: 64 MiB physical per TC -> stay under
    return 96 * 1024 * 1024        # v5e/v6e: 128 MiB physical


def _row_tile(m, *, n_cores=1, max_tile=1024):
    """Largest row tile (multiple of 8) dividing m, capped at max_tile, that
    yields at least n_cores grid blocks.  Falls back to one full block when m
    is not a multiple of 8 (block == full array dim is legal)."""
    if m % 8 != 0:
        return m
    cap = min(max_tile, m)
    cap -= cap % 8
    t = cap
    while t >= 8:
        if m % t == 0 and (m // t) >= n_cores:
            return t
        t -= 8
    return m


# ------------------------------- param prep ---------------------------------

def prepare_ffn_params(ffn_p):
    """One-time weight preparation (bf16 weights, f32 row-vector biases).
    Do this OUTSIDE the per-call path so no per-call HBM cast pass is paid."""
    F = ffn_p["w1"].shape[1]
    D = ffn_p["w2"].shape[1]
    return {
        "w1": ffn_p["w1"].astype(jnp.bfloat16),
        "w2": ffn_p["w2"].astype(jnp.bfloat16),
        "b1": ffn_p["b1"].reshape(1, F).astype(jnp.float32),
        "b2": ffn_p["b2"].reshape(1, D).astype(jnp.float32),
    }


# ------------------------------- wrappers -----------------------------------

def layernorm(ln_p, x, eps=1e-6, out_dtype=None):
    """Pallas LayerNorm over the last dim of x (any leading shape)."""
    orig = x.shape
    D = orig[-1]
    assert D >= 2, "unbiased std (ddof=1) requires at least 2 features"
    x2 = x.reshape(-1, D)                              # native dtype, no cast
    M = x2.shape[0]
    tm = _row_tile(M, n_cores=_num_tensorcores())
    g = ln_p["g"].reshape(1, D).astype(jnp.float32)
    b = ln_p["b"].reshape(1, D).astype(jnp.float32)
    out_dtype = x.dtype if out_dtype is None else out_dtype

    out = pl.pallas_call(
        functools.partial(_layernorm_kernel, eps=eps),
        out_shape=jax.ShapeDtypeStruct((M, D), out_dtype),
        grid=(M // tm,),
        in_specs=[
            pl.BlockSpec((tm, D), lambda i: (i, 0)),
            pl.BlockSpec((1, D), lambda i: (0, 0)),
            pl.BlockSpec((1, D), lambda i: (0, 0)),
        ],
        out_specs=pl.BlockSpec((tm, D), lambda i: (i, 0)),
        compiler_params=pltpu.CompilerParams(
            dimension_semantics=("parallel",),
            vmem_limit_bytes=_vmem_limit_bytes()),
    )(x2, g, b)
    return out.reshape(orig)


def sublayer_connection(ln_p, x, sublayer, eps=1e-6):
    """Faithful generic form: x + sublayer(LayerNorm(x)); sublayer is any JAX fn.
    (Arbitrary callables cannot be fused into the kernel -- residual is glue.)"""
    return x + sublayer(layernorm(ln_p, x, eps=eps))


def _fused_ffn_call(x2, g, b, w1, b1, w2, b2, *, tm, eps, single_buffer_consts):
    M, D = x2.shape
    F = w1.shape[1]
    # Constant-index operands: their block index never changes, so request
    # single buffering (default 2-deep pipelining would just waste VMEM).
    ckw = dict(pipeline_mode=pl.Buffered(1)) if single_buffer_consts else {}
    in_specs = [
        pl.BlockSpec((tm, D), lambda i: (i, 0)),          # x rows (pipelined)
        pl.BlockSpec((1, D), lambda i: (0, 0), **ckw),    # LN gain
        pl.BlockSpec((1, D), lambda i: (0, 0), **ckw),    # LN bias
        pl.BlockSpec((D, F), lambda i: (0, 0), **ckw),    # W1 (resident, bf16)
        pl.BlockSpec((1, F), lambda i: (0, 0), **ckw),    # b1
        pl.BlockSpec((F, D), lambda i: (0, 0), **ckw),    # W2 (resident, bf16)
        pl.BlockSpec((1, D), lambda i: (0, 0), **ckw),    # b2
    ]
    return pl.pallas_call(
        functools.partial(_fused_sublayer_ffn_kernel, eps=eps),
        out_shape=jax.ShapeDtypeStruct((M, D), x2.dtype),
        grid=(M // tm,),
        in_specs=in_specs,
        out_specs=pl.BlockSpec((tm, D), lambda i: (i, 0)),
        compiler_params=pltpu.CompilerParams(
            dimension_semantics=("parallel",),
            vmem_limit_bytes=_vmem_limit_bytes()),
    )(x2, g, b, w1, b1, w2, b2)


def sublayer_connection_ffn(ln_p, ffn_bf16, x, eps=1e-6):
    """Fused fast path: LN + Linear/ReLU/Linear + residual in one pallas_call.
    `ffn_bf16` must come from prepare_ffn_params() (bf16 weights, f32 biases).
    Keeps resident bf16 weights in VMEM; at production d_ff sizes that exceed
    ~half the VMEM budget, switch to an F-tiled reduction grid instead.
    # TODO(synk): F(d_ff)-tiled reduction-axis variant for very large d_ff."""
    orig = x.shape
    D = orig[-1]
    assert D >= 2, "unbiased std (ddof=1) requires at least 2 features"
    x2 = x.reshape(-1, D)                              # native dtype, no cast
    M = x2.shape[0]
    tm = _row_tile(M, n_cores=_num_tensorcores())

    g = ln_p["g"].reshape(1, D).astype(jnp.float32)
    b = ln_p["b"].reshape(1, D).astype(jnp.float32)
    w1, b1 = ffn_bf16["w1"], ffn_bf16["b1"]
    w2, b2 = ffn_bf16["w2"], ffn_bf16["b2"]

    try:
        out = _fused_ffn_call(x2, g, b, w1, b1, w2, b2, tm=tm, eps=eps,
                              single_buffer_consts=True)
    except Exception:
        # Fallback: default (double-buffered) pipelining for constant operands.
        out = _fused_ffn_call(x2, g, b, w1, b1, w2, b2, tm=tm, eps=eps,
                              single_buffer_consts=False)
    return out.reshape(orig)


# ------------------------------- reference ----------------------------------

def _reference(x, ln_p, ffn_p, eps):
    d = x.shape[-1]
    xf = x.astype(jnp.float32)
    mean = jnp.mean(xf, axis=-1, keepdims=True)
    diff = xf - mean
    std = jnp.sqrt(jnp.sum(diff * diff, axis=-1, keepdims=True) / (d - 1))
    xn = ln_p["g"] * diff / (std + eps) + ln_p["b"]
    h = jnp.maximum(xn @ ffn_p["w1"] + ffn_p["b1"], 0.0)
    return xf + (h @ ffn_p["w2"] + ffn_p["b2"])


# ---------------------------------- main ------------------------------------

if __name__ == "__main__":
    # Lane-dense feature dims (multiples of 128).  Rows = B*T = 128: on 1-TC
    # chips (v5e/v6e) that is a single 128-row block (no pointless split); on
    # multi-TC chips (v7x) the TC-aware tiler gives >=2 blocks of 64 rows.
    B, T, D, F = 2, 64, 128, 256
    eps = 1e-6

    key = jax.random.PRNGKey(0)
    kx, k1, k2, k3, k4 = jax.random.split(key, 5)
    x = jax.random.normal(kx, (B, T, D), jnp.float32)

    # LayerNorm params match the module init (ones / zeros).
    ln_p = {"g": jnp.ones((1, D), jnp.float32),
            "b": jnp.zeros((1, D), jnp.float32)}
    bound1 = 1.0 / math.sqrt(D)
    bound2 = 1.0 / math.sqrt(F)
    ffn_p = {
        "w1": jax.random.uniform(k1, (D, F), jnp.float32, -bound1, bound1),
        "b1": jax.random.uniform(k2, (1, F), jnp.float32, -bound1, bound1),
        "w2": jax.random.uniform(k3, (F, D), jnp.float32, -bound2, bound2),
        "b2": jax.random.uniform(k4, (1, D), jnp.float32, -bound2, bound2),
    }
    # TODO(synk): training-mode dropout (stochastic mask) not implemented; eval
    # mode dropout is identity, which is what this forward pass computes.

    ref = _reference(x, ln_p, ffn_p, eps)

    # One-time weight prep (bf16) outside the call path -- no per-call cast.
    ffn_bf16 = prepare_ffn_params(ffn_p)

    # Fused fast path (LN + FFN + residual in one kernel, bf16 MXU inputs).
    out = sublayer_connection_ffn(ln_p, ffn_bf16, x, eps=eps)
    jax.block_until_ready(out)
    assert out.shape == (B, T, D) and out.dtype == x.dtype
    assert bool(jnp.all(jnp.isfinite(out)))
    err = float(jnp.max(jnp.abs(out.astype(jnp.float32) - ref)))
    assert err < 5e-2, f"fused path max|err|={err}"

    # Faithful generic path (arbitrary callable sublayer, f32 throughout).
    def ffn_sublayer(z):
        h = jnp.maximum(z @ ffn_p["w1"] + ffn_p["b1"], 0.0)
        return h @ ffn_p["w2"] + ffn_p["b2"]

    out_g = sublayer_connection(ln_p, x, ffn_sublayer, eps=eps)
    jax.block_until_ready(out_g)
    err_g = float(jnp.max(jnp.abs(out_g - ref)))
    assert err_g < 1e-2, f"generic path max|err|={err_g}"

    print("KERNEL_OK")
</pallas_src>

<mosaic_0001>
module attributes {stable_mosaic.version = 11 : i64} {
  func.func @_fused_sublayer_ffn_kernel(%arg0: i32, %arg1: memref<64x128xf32, #tpu.memory_space<vmem>>, %arg2: memref<1x128xf32, #tpu.memory_space<vmem>>, %arg3: memref<1x128xf32, #tpu.memory_space<vmem>>, %arg4: memref<128x256xbf16, #tpu.memory_space<vmem>>, %arg5: memref<1x256xf32, #tpu.memory_space<vmem>>, %arg6: memref<256x128xbf16, #tpu.memory_space<vmem>>, %arg7: memref<1x128xf32, #tpu.memory_space<vmem>>, %arg8: memref<64x128xf32, #tpu.memory_space<vmem>>) attributes {dimension_semantics = [#tpu.dimension_semantics<parallel>], iteration_bounds = array<i64: 2>, scalar_prefetch = 0 : i64, scratch_operands = 0 : i64, tpu.core_type = #tpu.core_type<tc>, window_params = [{transform_indices = @transform_0, window_bounds = array<i64: 64, 128>}, {pipeline_mode = #tpu.pipeline_mode<synchronous>, transform_indices = @transform_1, window_bounds = array<i64: 1, 128>}, {pipeline_mode = #tpu.pipeline_mode<synchronous>, transform_indices = @transform_2, window_bounds = array<i64: 1, 128>}, {pipeline_mode = #tpu.pipeline_mode<synchronous>, transform_indices = @transform_3, window_bounds = array<i64: 128, 256>}, {pipeline_mode = #tpu.pipeline_mode<synchronous>, transform_indices = @transform_4, window_bounds = array<i64: 1, 256>}, {pipeline_mode = #tpu.pipeline_mode<synchronous>, transform_indices = @transform_5, window_bounds = array<i64: 256, 128>}, {pipeline_mode = #tpu.pipeline_mode<synchronous>, transform_indices = @transform_6, window_bounds = array<i64: 1, 128>}, {transform_indices = @transform_7, window_bounds = array<i64: 64, 128>}]} {
    %c0 = arith.constant 0 : index
    %c0_0 = arith.constant 0 : index
    %0 = vector.load %arg1[%c0, %c0_0] : memref<64x128xf32, #tpu.memory_space<vmem>>, vector<64x128xf32>
    %cst = arith.constant dense<0.000000e+00> : vector<64xf32>
    %1 = vector.multi_reduction <add>, %0, %cst [1] : vector<64x128xf32> to vector<64xf32>
    %2 = vector.shape_cast %1 : vector<64xf32> to vector<64x1xf32>
    %cst_1 = arith.constant 1.280000e+02 : f32
    %3 = vector.broadcast %cst_1 : f32 to vector<64x1xf32>
    %4 = arith.divf %2, %3 : vector<64x1xf32>
    %5 = vector.broadcast %4 : vector<64x1xf32> to vector<64x128xf32>
    %6 = arith.subf %0, %5 : vector<64x128xf32>
    %7 = arith.mulf %6, %6 : vector<64x128xf32>
    %cst_2 = arith.constant dense<0.000000e+00> : vector<64xf32>
    %8 = vector.multi_reduction <add>, %7, %cst_2 [1] : vector<64x128xf32> to vector<64xf32>
    %9 = vector.shape_cast %8 : vector<64xf32> to vector<64x1xf32>
    %cst_3 = arith.constant 1.270000e+02 : f32
    %10 = vector.broadcast %cst_3 : f32 to vector<64x1xf32>
    %11 = arith.divf %9, %10 : vector<64x1xf32>
    %12 = math.sqrt %11 : vector<64x1xf32>
    %cst_4 = arith.constant 9.99999997E-7 : f32
    %13 = vector.broadcast %cst_4 : f32 to vector<64x1xf32>
    %14 = arith.addf %12, %13 : vector<64x1xf32>
    %15 = tpu.reciprocal %14 : vector<64x1xf32> -> vector<64x1xf32>
    %c0_5 = arith.constant 0 : index
    %c0_6 = arith.constant 0 : index
    %16 = vector.load %arg2[%c0_5, %c0_6] : memref<1x128xf32, #tpu.memory_space<vmem>>, vector<1x128xf32>
    %17 = vector.broadcast %16 : vector<1x128xf32> to vector<64x128xf32>
    %18 = arith.mulf %17, %6 : vector<64x128xf32>
    %19 = vector.broadcast %15 : vector<64x1xf32> to vector<64x128xf32>
    %20 = arith.mulf %18, %19 : vector<64x128xf32>
    %c0_7 = arith.constant 0 : index
    %c0_8 = arith.constant 0 : index
    %21 = vector.load %arg3[%c0_7, %c0_8] : memref<1x128xf32, #tpu.memory_space<vmem>>, vector<1x128xf32>
    %22 = vector.broadcast %21 : vector<1x128xf32> to vector<64x128xf32>
    %23 = arith.addf %20, %22 : vector<64x128xf32>
    %24 = arith.truncf %23 : vector<64x128xf32> to vector<64x128xbf16>
    %c0_9 = arith.constant 0 : index
    %c0_10 = arith.constant 0 : index
    %25 = vector.load %arg4[%c0_9, %c0_10] : memref<128x256xbf16, #tpu.memory_space<vmem>>, vector<128x256xbf16>
    %cst_11 = arith.constant dense<0.000000e+00> : vector<64x256xf32>
    %26 = tpu.matmul %24, %25, %cst_11 {dimension_numbers = #tpu.dot_dimension_numbers<[1], [0], [0], [1], [0, 0, 1, 1], [], []>} : vector<64x128xbf16>, vector<128x256xbf16>, vector<64x256xf32> -> vector<64x256xf32>
    %c0_12 = arith.constant 0 : index
    %c0_13 = arith.constant 0 : index
    %27 = vector.load %arg5[%c0_12, %c0_13] : memref<1x256xf32, #tpu.memory_space<vmem>>, vector<1x256xf32>
    %28 = vector.broadcast %27 : vector<1x256xf32> to vector<64x256xf32>
    %29 = arith.addf %26, %28 : vector<64x256xf32>
    %cst_14 = arith.constant 0.000000e+00 : f32
    %30 = vector.broadcast %cst_14 : f32 to vector<64x256xf32>
    %31 = arith.maximumf %29, %30 : vector<64x256xf32>
    %32 = arith.truncf %31 : vector<64x256xf32> to vector<64x256xbf16>
    %c0_15 = arith.constant 0 : index
    %c0_16 = arith.constant 0 : index
    %33 = vector.load %arg6[%c0_15, %c0_16] : memref<256x128xbf16, #tpu.memory_space<vmem>>, vector<256x128xbf16>
    %cst_17 = arith.constant dense<0.000000e+00> : vector<64x128xf32>
    %34 = tpu.matmul %32, %33, %cst_17 {dimension_numbers = #tpu.dot_dimension_numbers<[1], [0], [0], [1], [0, 0, 1, 1], [], []>} : vector<64x256xbf16>, vector<256x128xbf16>, vector<64x128xf32> -> vector<64x128xf32>
    %c0_18 = arith.constant 0 : index
    %c0_19 = arith.constant 0 : index
    %35 = vector.load %arg7[%c0_18, %c0_19] : memref<1x128xf32, #tpu.memory_space<vmem>>, vector<1x128xf32>
    %36 = vector.broadcast %35 : vector<1x128xf32> to vector<64x128xf32>
    %37 = arith.addf %34, %36 : vector<64x128xf32>
    %38 = arith.addf %0, %37 : vector<64x128xf32>
    %c0_20 = arith.constant 0 : index
    %c0_21 = arith.constant 0 : index
    %39 = vector.load %arg8[%c0_20, %c0_21] : memref<64x128xf32, #tpu.memory_space<vmem>>, vector<64x128xf32>
    tpu.vector_store %arg8[%c0_20, %c0_21], %38 {strides = array<i32>} : memref<64x128xf32, #tpu.memory_space<vmem>>, vector<64x128xf32>,
    return
  }
  func.func @transform_0(%arg0: i32) -> (i32, i32) {
    %c0_i32 = arith.constant 0 : i32
    %c0_i32_0 = arith.constant 0 : i32
    return %arg0, %c0_i32 : i32, i32
  }
  func.func @transform_1(%arg0: i32) -> (i32, i32) {
    %c0_i32 = arith.constant 0 : i32
    %c0_i32_0 = arith.constant 0 : i32
    %c0_i32_1 = arith.constant 0 : i32
    return %c0_i32, %c0_i32_0 : i32, i32
  }
  func.func @transform_2(%arg0: i32) -> (i32, i32) {
    %c0_i32 = arith.constant 0 : i32
    %c0_i32_0 = arith.constant 0 : i32
    %c0_i32_1 = arith.constant 0 : i32
    return %c0_i32, %c0_i32_0 : i32, i32
  }
  func.func @transform_3(%arg0: i32) -> (i32, i32) {
    %c0_i32 = arith.constant 0 : i32
    %c0_i32_0 = arith.constant 0 : i32
    %c0_i32_1 = arith.constant 0 : i32
    return %c0_i32, %c0_i32_0 : i32, i32
  }
  func.func @transform_4(%arg0: i32) -> (i32, i32) {
    %c0_i32 = arith.constant 0 : i32
    %c0_i32_0 = arith.constant 0 : i32
    %c0_i32_1 = arith.constant 0 : i32
    return %c0_i32, %c0_i32_0 : i32, i32
  }
  func.func @transform_5(%arg0: i32) -> (i32, i32) {
    %c0_i32 = arith.constant 0 : i32
    %c0_i32_0 = arith.constant 0 : i32
    %c0_i32_1 = arith.constant 0 : i32
    return %c0_i32, %c0_i32_0 : i32, i32
  }
  func.func @transform_6(%arg0: i32) -> (i32, i32) {
    %c0_i32 = arith.constant 0 : i32
    %c0_i32_0 = arith.constant 0 : i32
    %c0_i32_1 = arith.constant 0 : i32
    return %c0_i32, %c0_i32_0 : i32, i32
  }
  func.func @transform_7(%arg0: i32) -> (i32, i32) {
    %c0_i32 = arith.constant 0 : i32
    %c0_i32_0 = arith.constant 0 : i32
    return %arg0, %c0_i32 : i32, i32
  }
}

module attributes {stable_mosaic.version = 11 : i64} {
  func.func @_fused_sublayer_ffn_kernel(%arg0: i32, %arg1: memref<64x128xf32, #tpu.memory_space<vmem>>, %arg2: memref<1x128xf32, #tpu.memory_space<vmem>>, %arg3: memref<1x128xf32, #tpu.memory_space<vmem>>, %arg4: memref<128x256xbf16, #tpu.memory_space<vmem>>, %arg5: memref<1x256xf32, #tpu.memory_space<vmem>>, %arg6: memref<256x128xbf16, #tpu.memory_space<vmem>>, %arg7: memref<1x128xf32, #tpu.memory_space<vmem>>, %arg8: memref<64x128xf32, #tpu.memory_space<vmem>>) attributes {dimension_semantics = [#tpu.dimension_semantics<parallel>], iteration_bounds = array<i64: 2>, scalar_prefetch = 0 : i64, scratch_operands = 0 : i64, tpu.core_type = #tpu.core_type<tc>, window_params = [{transform_indices = @transform_0, window_bounds = array<i64: 64, 128>}, {pipeline_mode = #tpu.pipeline_mode<synchronous>, transform_indices = @transform_1, window_bounds = array<i64: 1, 128>}, {pipeline_mode = #tpu.pipeline_mode<synchronous>, transform_indices = @transform_2, window_bounds = array<i64: 1, 128>}, {pipeline_mode = #tpu.pipeline_mode<synchronous>, transform_indices = @transform_3, window_bounds = array<i64: 128, 256>}, {pipeline_mode = #tpu.pipeline_mode<synchronous>, transform_indices = @transform_4, window_bounds = array<i64: 1, 256>}, {pipeline_mode = #tpu.pipeline_mode<synchronous>, transform_indices = @transform_5, window_bounds = array<i64: 256, 128>}, {pipeline_mode = #tpu.pipeline_mode<synchronous>, transform_indices = @transform_6, window_bounds = array<i64: 1, 128>}, {transform_indices = @transform_7, window_bounds = array<i64: 64, 128>}]} {
    %c0 = arith.constant 0 : index
    %c0_0 = arith.constant 0 : index
    %0 = vector.load %arg1[%c0, %c0_0] : memref<64x128xf32, #tpu.memory_space<vmem>>, vector<64x128xf32>
    %cst = arith.constant dense<0.000000e+00> : vector<64xf32>
    %1 = vector.multi_reduction <add>, %0, %cst [1] : vector<64x128xf32> to vector<64xf32>
    %2 = vector.shape_cast %1 : vector<64xf32> to vector<64x1xf32>
    %cst_1 = arith.constant 1.280000e+02 : f32
    %3 = vector.broadcast %cst_1 : f32 to vector<64x1xf32>
    %4 = arith.divf %2, %3 : vector<64x1xf32>
    %5 = vector.broadcast %4 : vector<64x1xf32> to vector<64x128xf32>
    %6 = arith.subf %0, %5 : vector<64x128xf32>
    %7 = arith.mulf %6, %6 : vector<64x128xf32>
    %cst_2 = arith.constant dense<0.000000e+00> : vector<64xf32>
    %8 = vector.multi_reduction <add>, %7, %cst_2 [1] : vector<64x128xf32> to vector<64xf32>
    %9 = vector.shape_cast %8 : vector<64xf32> to vector<64x1xf32>
    %cst_3 = arith.constant 1.270000e+02 : f32
    %10 = vector.broadcast %cst_3 : f32 to vector<64x1xf32>
    %11 = arith.divf %9, %10 : vector<64x1xf32>
    %12 = math.sqrt %11 : vector<64x1xf32>
    %cst_4 = arith.constant 9.99999997E-7 : f32
    %13 = vector.broadcast %cst_4 : f32 to vector<64x1xf32>
    %14 = arith.addf %12, %13 : vector<64x1xf32>
    %15 = tpu.reciprocal %14 : vector<64x1xf32> -> vector<64x1xf32>
    %c0_5 = arith.constant 0 : index
    %c0_6 = arith.constant 0 : index
    %16 = vector.load %arg2[%c0_5, %c0_6] : memref<1x128xf32, #tpu.memory_space<vmem>>, vector<1x128xf32>
    %17 = vector.broadcast %16 : vector<1x128xf32> to vector<64x128xf32>
    %18 = arith.mulf %17, %6 : vector<64x128xf32>
    %19 = vector.broadcast %15 : vector<64x1xf32> to vector<64x128xf32>
    %20 = arith.mulf %18, %19 : vector<64x128xf32>
    %c0_7 = arith.constant 0 : index
    %c0_8 = arith.constant 0 : index
    %21 = vector.load %arg3[%c0_7, %c0_8] : memref<1x128xf32, #tpu.memory_space<vmem>>, vector<1x128xf32>
    %22 = vector.broadcast %21 : vector<1x128xf32> to vector<64x128xf32>
    %23 = arith.addf %20, %22 : vector<64x128xf32>
    %24 = arith.truncf %23 : vector<64x128xf32> to vector<64x128xbf16>
    %c0_9 = arith.constant 0 : index
    %c0_10 = arith.constant 0 : index
    %25 = vector.load %arg4[%c0_9, %c0_10] : memref<128x256xbf16, #tpu.memory_space<vmem>>, vector<128x256xbf16>
    %cst_11 = arith.constant dense<0.000000e+00> : vector<64x256xf32>
    %26 = tpu.matmul %24, %25, %cst_11 {dimension_numbers = #tpu.dot_dimension_numbers<[1], [0], [0], [1], [0, 0, 1, 1], [], []>} : vector<64x128xbf16>, vector<128x256xbf16>, vector<64x256xf32> -> vector<64x256xf32>
    %c0_12 = arith.constant 0 : index
    %c0_13 = arith.constant 0 : index
    %27 = vector.load %arg5[%c0_12, %c0_13] : memref<1x256xf32, #tpu.memory_space<vmem>>, vector<1x256xf32>
    %28 = vector.broadcast %27 : vector<1x256xf32> to vector<64x256xf32>
    %29 = arith.addf %26, %28 : vector<64x256xf32>
    %cst_14 = arith.constant 0.000000e+00 : f32
    %30 = vector.broadcast %cst_14 : f32 to vector<64x256xf32>
    %31 = arith.maximumf %29, %30 : vector<64x256xf32>
    %32 = arith.truncf %31 : vector<64x256xf32> to vector<64x256xbf16>
    %c0_15 = arith.constant 0 : index
    %c0_16 = arith.constant 0 : index
    %33 = vector.load %arg6[%c0_15, %c0_16] : memref<256x128xbf16, #tpu.memory_space<vmem>>, vector<256x128xbf16>
    %cst_17 = arith.constant dense<0.000000e+00> : vector<64x128xf32>
    %34 = tpu.matmul %32, %33, %cst_17 {dimension_numbers = #tpu.dot_dimension_numbers<[1], [0], [0], [1], [0, 0, 1, 1], [], []>} : vector<64x256xbf16>, vector<256x128xbf16>, vector<64x128xf32> -> vector<64x128xf32>
    %c0_18 = arith.constant 0 : index
    %c0_19 = arith.constant 0 : index
    %35 = vector.load %arg7[%c0_18, %c0_19] : memref<1x128xf32, #tpu.memory_space<vmem>>, vector<1x128xf32>
    %36 = vector.broadcast %35 : vector<1x128xf32> to vector<64x128xf32>
    %37 = arith.addf %34, %36 : vector<64x128xf32>
    %38 = arith.addf %0, %37 : vector<64x128xf32>
    %c0_20 = arith.constant 0 : index
    %c0_21 = arith.constant 0 : index
    %39 = vector.load %arg8[%c0_20, %c0_21] : memref<64x128xf32, #tpu.memory_space<vmem>>, vector<64x128xf32>
    tpu.vector_store %arg8[%c0_20, %c0_21], %38 {strides = array<i32>} : memref<64x128xf32, #tpu.memory_space<vmem>>, vector<64x128xf32>,
    return
  }
  func.func @transform_0(%arg0: i32) -> (i32, i32) {
    %c0_i32 = arith.constant 0 : i32
    %c0_i32_0 = arith.constant 0 : i32
    return %arg0, %c0_i32 : i32, i32
  }
  func.func @transform_1(%arg0: i32) -> (i32, i32) {
    %c0_i32 = arith.constant 0 : i32
    %c0_i32_0 = arith.constant 0 : i32
    %c0_i32_1 = arith.constant 0 : i32
    return %c0_i32, %c0_i32_0 : i32, i32
  }
  func.func @transform_2(%arg0: i32) -> (i32, i32) {
    %c0_i32 = arith.constant 0 : i32
    %c0_i32_0 = arith.constant 0 : i32
    %c0_i32_1 = arith.constant 0 : i32
    return %c0_i32, %c0_i32_0 : i32, i32
  }
  func.func @transform_3(%arg0: i32) -> (i32, i32) {
    %c0_i32 = arith.constant 0 : i32
    %c0_i32_0 = arith.constant 0 : i32
    %c0_i32_1 = arith.constant 0 : i32
    return %c0_i32, %c0_i32_0 : i32, i32
  }
  func.func @transform_4(%arg0: i32) -> (i32, i32) {
    %c0_i32 = arith.constant 0 : i32
    %c0_i32_0 = arith.constant 0 : i32
    %c0_i32_1 = arith.constant 0 : i32
    return %c0_i32, %c0_i32_0 : i32, i32
  }
  func.func @transform_5(%arg0: i32) -> (i32, i32) {
    %c0_i32 = arith.constant 0 : i32
    %c0_i32_0 = arith.constant 0 : i32
    %c0_i32_1 = arith.constant 0 : i32
    return %c0_i32, %c0_i32_0 : i32, i32
  }
  func.func @transform_6(%arg0: i32) -> (i32, i32) {
    %c0_i32 = arith.constant 0 : i32
    %c0_i32_0 = arith.constant 0 : i32
    %c0_i32_1 = arith.constant 0 : i32
    return %c0_i32, %c0_i32_0 : i32, i32
  }
  func.func @transform_7(%arg0: i32) -> (i32, i32) {
    %c0_i32 = arith.constant 0 : i32
    %c0_i32_0 = arith.constant 0 : i32
    return %arg0, %c0_i32 : i32, i32
  }
}

</mosaic_0001>

<bundles_post_ra>
// kernel: tpu_custom_call.1
= control target key start
LH: loop header
LB: loop body
LE: loop exit
PB: predicated region body
PF: predicated region fallthrough
CT: control target
= control target key end

     0   :  { %s1902_s0 = inlined_call_operand.hbm [shape: f32[128,128], index: 0, kind: input, shape index: {}]   ;;  %s1903_s1 = inlined_call_operand.vmem [shape: f32[1,128], index: 1, kind: input, shape index: {}]   ;;  %s1904_s2 = inlined_call_operand.hbm [shape: f32[1,128], index: 2, kind: input, shape index: {}]   ;;  %s1905_s3 = inlined_call_operand.hbm [shape: bf16[128,256], index: 3, kind: input, shape index: {}]   ;;  %s1906_s4 = inlined_call_operand.vmem [shape: f32[1,256], index: 4, kind: input, shape index: {}]   ;;  %s1907_s5 = inlined_call_operand.hbm [shape: bf16[256,128], index: 5, kind: input, shape index: {}]   ;;  %s1908_s6 = inlined_call_operand.vmem [shape: f32[1,128], index: 6, kind: input, shape index: {}]   ;;  %s1909_s7 = inlined_call_operand.hbm [shape: f32[128,128], index: 7, kind: output, shape index: {}]  }
   0x1   :  { %1916 = sst [smem:[#allocation15_spill]] %s1904_s2 }
   0x2   :  { %12 = vsyncpa [#allocation3], 0 }
   0x3   :  { %14 = vsyncpa [#allocation3 + $0x1], 0 }
   0x4   :  { %15 = vsyncpa [#allocation6], 0 }
   0x5   :  { %16 = vsyncpa [#allocation9], 0 }
   0x6   :  { %17 = vsyncpa [#allocation4], 0 }
   0x7   :  { %19 = vsyncpa [#allocation4 + $0x1], 0  ;;  %s1552_s24 = smov 0   ;;  %s1554_s25 = smov 0  }
   0x8   :  { %s1556_s26 = smov 0   ;;  %s1558_s27 = smov 0  }
   0x9 LB: > { %s1573_s28 = sadd.s32 4294967295, %s1498_s27   ;;  %s1067_s29 = sadd.s32 4294967294, %s1498_s27   ;;  %s1498_s27 = sphi %s1558_s27, %s1938_s27   ;;  %s1494_s26 = sphi %s1556_s26, %s1937_s26   ;;  %s1490_s25 = sphi %s1554_s25, %s1936_s25   ;;  %s1486_s24 = sphi %s1552_s24, %s1935_s24  }
   0xa   : > { %p45_p0 = scmp.ne.s32.totalorder %s1490_s25, %s1486_s24  ;;  %p1910_p1 = scmp.eq.s32.totalorder %s1573_s28, 0 }
   0xb   : > { %p195_p2 = scmp.eq.s32.totalorder %s1573_s28, 1  ;;  %p201_p3 = scmp.eq.s32.totalorder %s1067_s29, 1 }
   0xc   : > { %p1582_p4 = por %p1910_p1, %p45_p0  ;;  %p1068_p5 = scmp.ge.s32.totalorder %s1498_s27, 1 }
   0xd   : > { %p1587_p6 = por %p201_p3, %p45_p0  ;;  %p208_p7 = scmp.lt.s32.totalorder %s1498_s27, 3 }
   0xe   : > { %s1917_s30 = scalar_select %p1582_p4, 1, 0 }
   0xf   : > { %s1918_s8 = scalar_select %p1587_p6, 1, 0 }
  0x10   : > { %p1592_p8 = pnand %p1068_p5, %p208_p7  ;;  %s1500_s10 = smov [#allocation5]  }
  0x11   : > { %s224_s11 = sshll.u32 %s1500_s10, 4  ;;  %s1501_s12 = smov [#allocation7]   ;;  %s225_s11 = int_to_ptr.vmem [resolvable:$true] %s224_s11 }
  0x12   : > { %s1919_s9 = scalar_select %p1592_p8, 1, 0 }
  0x13   : > { %p1180_p10 = pneg %p1592_p8  ;;  %s234_s13 = sshll.u32 %s1501_s12, 4  ;;  %s1605_s13 = int_to_ptr.vmem [resolvable:$true] %s234_s13 }
  0x14   : > { %s1502_s15 = smov [#allocation8]   ;;  %s1331_s17 = scalar_lea.vmem %s225_s11, 16 }
  0x15   : > { %p1601_p11 = pnand %p1180_p10, %p1910_p1  ;;  %s250_s16 = sshll.u32 %s1502_s15, 4  ;;  %s251_s16 = int_to_ptr.vmem [resolvable:$true] %s250_s16 }
  0x16   : > { %p1332_p13 = scmp.ne.s32.totalorder %s225_s11, %s1331_s17  ;;  %s1338_s18 = scalar_lea.vmem %s225_s11, 32 }
  0x17   : > { %p1322_p12 = pneg %p1601_p11  ;;  %p1339_p5 = scmp.lt.s32.totalorder %s225_s11, %s225_s11 }
  0x18   : > { %p1340_p7 = scmp.lt.s32.totalorder %s1338_s18, %s1331_s17 }
  0x19   : > { %p1334_p0 = pnand %p1332_p13, %p1322_p12 }
  0x1a   : > { %p1341_p10 = por %p1340_p7, %p1339_p5 }
  0x1b   : > { %p1335_p3 = pneg %p1334_p0 }
  0x1d   : > { %p1342_p9 = pnand %p1341_p10, %p1335_p3 }
  0x1f   : > { %1345 = shalt.err (!%p1342_p9)
}
  0x20   : > { %s1921_s2 = sld [smem:[#allocation15_spill]]  ;;  %s1357_s21 = scalar_lea.vmem %s1605_s13, 2048 }
  0x21   : > { %p1358_p1 = scmp.ne.s32.totalorder %s1605_s13, %s1357_s21  ;;  %p1365_p5 = scmp.lt.s32.totalorder %s1605_s13, %s1605_s13 }
  0x22   : > { %p1366_p3 = scmp.lt.s32.totalorder %s1357_s21, %s1357_s21 }
  0x23   : > { %p1360_p13 = pnand %p1358_p1, %p1322_p12 }
  0x24   : > { %p1367_p9 = por %p1366_p3, %p1365_p5 }
  0x25   : > { %p1361_p0 = pneg %p1360_p13 }
  0x26   : > { %1183 = dma.hbm_to_vmem [thread:$0]  (!%p1601_p11), %s1921_s2, 16, %s225_s11, [#allocation6]  }
  0x27   : > { %p1368_p7 = pnand %p1367_p9, %p1361_p0 }
  0x29   : > { %1371 = shalt.err (!%p1368_p7)
}
  0x2a   : > { %s1911_s22 = smov 128   ;;  %s1912_s23 = smov 8  }
  0x2b   : > { %1186 = dma.hbm_to_vmem [thread:$0]  (!%p1601_p11), %s1905_s3, 2048, %s1605_s13, [#allocation6], %s1911_s22, %s1911_s22, %s1912_s23  }
  0x2c   : > { %s1383_s11 = scalar_lea.vmem %s251_s16, 2048  ;;  %p1391_p0 = scmp.lt.s32.totalorder %s251_s16, %s251_s16 }
  0x2d   : > { %p1384_p1 = scmp.ne.s32.totalorder %s251_s16, %s1383_s11  ;;  %p1392_p5 = scmp.lt.s32.totalorder %s1383_s11, %s1383_s11 }
  0x2f   : > { %p1386_p10 = pnand %p1384_p1, %p1322_p12  ;;  %p1393_p3 = por %p1392_p5, %p1391_p0 }
  0x31   : > { %p1387_p13 = pneg %p1386_p10 }
  0x33   : > { %p1394_p9 = pnand %p1393_p3, %p1387_p13 }
  0x35   : > { %1397 = shalt.err (!%p1394_p9)
}
  0x36   : > { %s1505_s12 = smov 64   ;;  %s1506_s13 = smov 4  }
  0x37   : > { %1189 = dma.hbm_to_vmem [thread:$0]  (!%p1601_p11), %s1907_s5, 2048, %s251_s16, [#allocation9], %s1505_s12, %s1505_s12, %s1506_s13  }
  0x38   : > { %s1642_s18 = sadd.s32 1, %s1498_s27   ;;  %s32_s20 = sadd.s32 1, %s1494_s26 }
  0x39   : > { %s29_s19 = ssub.s32 %s1498_s27, %s1642_s18  ;;  %p39_p7 = scmp.ne.s32.totalorder %s1494_s26, %s1490_s25 }
  0x3a   : > { %p30_p12 = scmp.eq.s32.totalorder %s29_s19, 0  ;;  %p40_p1 = scmp.eq.s32.totalorder %s1498_s27, 0 }
  0x3b   : > { %p1201_p10 = scmp.lt.s32.totalorder %s1498_s27, 2  ;;  %p1656_p0 = por %p195_p2, %p39_p7 }
  0x3c   : > { %s1652_s21 = scalar_select %p30_p12, %s1494_s26, %s32_s20  }
  0x3d   : > { %p41_p13 = por %p40_p1, %p39_p7  ;;  %s267_s14 = sand.u32 1, %s1494_s26  }
  0x3e   : > { %s1922_s29 = scalar_select %p1656_p0, 1, 0 }
  0x3f   : > { %s1122_s10 = sshll.u32 %s1498_s27, 10  ;;  %s1073_s16 = sshll.u32 %s267_s14, 6 }
  0x40   : > { %s1665_s13 = scalar_lea.hbm %s1902_s0, %s1122_s10  ;;  %s271_s15 = scalar_lea.vmem [#allocation2], %s1073_s16 }
  0x41   : > { %s278_s17 = sshll.u32 %s271_s15, 4  ;;  %p1667_p11 = pnand %p1201_p10, %p41_p13  ;;  %s1671_s17 = int_to_ptr.vmem [resolvable:$true] %s278_s17 }
  0x42   : > { %s1673_s20 = scalar_lea.sflag [#allocation3], %s267_s14  ;;  %s1398_s22 = scalar_lea.hbm %s1665_s13, 1024 }
  0x43   : > { %p1399_p2 = scmp.ne.s32.totalorder %s1665_s13, %s1398_s22  ;;  %p1400_p5 = pneg %p1667_p11 }
  0x44   : > { %s1403_s16 = scalar_lea.hbm %s1902_s0, 2048  ;;  %p1404_p12 = scmp.lt.s32.totalorder %s1665_s13, %s1902_s0 }
  0x45   : > { %p1401_p3 = pnand %p1400_p5, %p1399_p2  ;;  %p1405_p7 = scmp.lt.s32.totalorder %s1403_s16, %s1398_s22 }
  0x47   : > { %p1402_p9 = pneg %p1401_p3  ;;  %p1406_p1 = por %p1405_p7, %p1404_p12 }
  0x49   : > { %p1407_p10 = pnand %p1406_p1, %p1402_p9 }
  0x4b   : > { %1410 = shalt.err (!%p1407_p10)
}
  0x4c   : > { %s1411_s14 = scalar_lea.vmem %s1671_s17, 1024  ;;  %s1507_s23 = smov [#allocation2]  }
  0x4d   : > { %p1412_p13 = scmp.ne.s32.totalorder %s1671_s17, %s1411_s14  ;;  %s1416_s2 = sshll.u32 %s1507_s23, 4  ;;  %s1417_s2 = int_to_ptr.vmem [resolvable:$false] %s1416_s2 }
  0x4e   : > { %s1418_s10 = scalar_lea.vmem %s1417_s2, 2048  ;;  %p1419_p3 = scmp.lt.s32.totalorder %s1671_s17, %s1417_s2 }
  0x4f   : > { %p1414_p6 = pnand %p1412_p13, %p1400_p5  ;;  %p1420_p0 = scmp.lt.s32.totalorder %s1418_s10, %s1411_s14 }
  0x51   : > { %p1415_p2 = pneg %p1414_p6  ;;  %p1421_p4 = por %p1420_p0, %p1419_p3 }
  0x53   : > { %p1422_p8 = pnand %p1421_p4, %p1415_p2 }
  0x55   : > { %1425 = shalt.err (!%p1422_p8)
}
  0x56   : > { %s1924_s22 = smov 8   ;;  %s1925_s11 = smov 128  }
  0x57   : > { %1193 = dma.hbm_to_vmem [thread:$0]  (!%p1667_p11), %s1665_s13, 1024, %s1671_s17, %s1673_s20, %s1925_s11, %s1925_s11, %s1924_s22  }
  0x58   : > { %p1926_p6 = scmp.ne.s32.totalorder %s1919_s9, 0 }
  0x59   : > { %s1700_s23 = sand.u32 (!%p1926_p6), 1, %s1490_s25   ;;  %p1927_p4 = scmp.ne.s32.totalorder (!%p1926_p6), %s1917_s30, 0 }
  0x5a   : > { %290 = sbr.rel (%p1926_p6) target bundleno = 881 (0x371), region = 48  ;;  %s1077_s2 = sshll.u32 (!%p1926_p6), %s1700_s23, 6 }
  0x5b   : > { %s293_s16 = scalar_lea.sflag (!%p1926_p6), [#allocation3], %s1700_s23  ;;  %s296_s19 = scalar_lea.vmem (!%p1926_p6), [#allocation2], %s1077_s2 }
  0x5f   : > { %1469 = dma.done.wait (%p1927_p4), %s293_s16, 1024  }
  0x60   : > { %1471 = vsyncadd (%p1927_p4), %s293_s16, 4294966272  ;;  %p1928_p8 = scmp.eq.s32.totalorder %s1573_s28, 0 }
  0x62   : > { %1473 = dma.done.wait (%p1928_p8), [#allocation6], 2064   ;;  %p1929_p0 = pmov %p1928_p8 }
  0x64   : > { %1475 = vsyncadd (%p1929_p0), [#allocation6], 4294965232  ;;  %p1930_p11 = pmov %p1929_p0 }
  0x65   : > { %p1931_p5 = pmov %p1929_p0 }
  0x66   : > { %1477 = dma.done.wait (%p1930_p11), [#allocation9], 2048  }
  0x67   : > { %1479 = vsyncadd (%p1931_p5), [#allocation9], 4294965248  ;;  %v1718_v0 = vld [vmem:[%s296_s19] sm:$0xff]  ;;  %v1720_v1 = vld [vmem:[%s296_s19 + $0x10] sm:$0xff]  ;;  %v1508_v56 = vmov 0   ;;  %s1835_s15 = scalar_lea.vmem [#allocation10], %s1077_s2 }
  0x68   : > { %350 = vadd.xlane.f32.xlu0 %v1718_v0  ;;  %354 = vadd.xlane.f32.xlu1 %v1720_v1  ;;  %v1724_v2 = vld [vmem:[%s296_s19 + $0x8] sm:$0xff]  ;;  %v1726_v3 = vld [vmem:[%s296_s19 + $0x18] sm:$0xff]  ;;  %v1728_v4 = vld [vmem:[%s296_s19 + $0x20] sm:$0xff]  ;;  %s1123_s14 = sshll.u32 %s1573_s28, 10  ;;  %s965_s10 = sshll.u32 %s1835_s15, 4  ;;  %s1857_s10 = int_to_ptr.vmem [resolvable:$true] %s965_s10 }
  0x69   : > { %v1730_v5 = vld [vmem:[%s296_s19 + $0x28] sm:$0xff]  ;;  %v1734_v6 = vld [vmem:[%s296_s19 + $0x30] sm:$0xff]  ;;  %v1736_v7 = vld [vmem:[%s296_s19 + $0x38] sm:$0xff]  ;;  %670 = vmatprep.mubr.bf16.mxu0 %v1508_v56  ;;  %s1855_s2 = scalar_lea.hbm %s1909_s7, %s1123_s14  ;;  %s952_s16 = scalar_lea.sflag [#allocation4], %s1700_s23 }
  0x6a   : > { %v1248_v40 = vld [vmem:[#allocation7 + $0x74] ss:$8 sps:$4 sm:$0xff]   ;;  %v1250_v41 = vld [vmem:[#allocation7 + $0x70] ss:$8 sps:$4 sm:$0xff]   ;;  %v1251_v42 = vld [vmem:[#allocation7 + $0x64] ss:$8 sps:$4 sm:$0xff]  }
  0x6b   : > { %638 = vmatprep.subr.bf16.mxu0 %v1248_v40  ;;  %v1253_v43 = vld [vmem:[#allocation7 + $0x60] ss:$8 sps:$4 sm:$0xff]   ;;  %v1254_v44 = vld [vmem:[#allocation7 + $0x54] ss:$8 sps:$4 sm:$0xff]   ;;  %v1256_v45 = vld [vmem:[#allocation7 + $0x50] ss:$8 sps:$4 sm:$0xff]  }
  0x6c   : > { %352 = vadd.xlane.f32.xlu0 %v1724_v2  ;;  %356 = vadd.xlane.f32.xlu1 %v1726_v3  ;;  %v1257_v46 = vld [vmem:[#allocation7 + $0x44] ss:$8 sps:$4 sm:$0xff]   ;;  %v1259_v47 = vld [vmem:[#allocation7 + $0x40] ss:$8 sps:$4 sm:$0xff]   ;;  %v1260_v48 = vld [vmem:[#allocation7 + $0x34] ss:$8 sps:$4 sm:$0xff]  }
  0x6d   : > { %639 = vmatpush1.bf16.msra.mxu0 %v1250_v41  ;;  %v1262_v49 = vld [vmem:[#allocation7 + $0x30] ss:$8 sps:$4 sm:$0xff]   ;;  %v1263_v50 = vld [vmem:[#allocation7 + $0x24] ss:$8 sps:$4 sm:$0xff]   ;;  %v1265_v51 = vld [vmem:[#allocation7 + $0x20] ss:$8 sps:$4 sm:$0xff]  }
  0x6e   : > { %640 = vmatprep.subr.bf16.mxu0 %v1251_v42  ;;  %v1266_v52 = vld [vmem:[#allocation7 + $0x14] ss:$8 sps:$4 sm:$0xff]   ;;  %v1268_v53 = vld [vmem:[#allocation7 + $0x10] ss:$8 sps:$4 sm:$0xff]   ;;  %v1269_v54 = vld [vmem:[#allocation7 + $0x4] ss:$8 sps:$4 sm:$0xff]  }
  0x6f   : > { %v1271_v55 = vld [vmem:[#allocation7] ss:$8 sps:$4 sm:$0xff]   ;;  %v1272_v57 = vld [vmem:[#allocation8 + $0x78] sm:$0xff]   ;;  %v1274_v59 = vld [vmem:[#allocation8 + $0x70] sm:$0xff]   ;;  %s1426_s19 = scalar_lea.vmem %s1857_s10, 1024  ;;  %p1932_p12 = scmp.ne.s32.totalorder %s1922_s29, 0 }
  0x70   : > { %358 = vadd.xlane.f32.xlu0 %v1728_v4  ;;  %360 = vadd.xlane.f32.xlu1 %v1730_v5  ;;  %v1273_v58 = vld [vmem:[#allocation8 + $0x38] sm:$0xff]   ;;  %v1275_v60 = vld [vmem:[#allocation8 + $0x30] sm:$0xff]   ;;  %v1276_v61 = vld [vmem:[#allocation8 + $0x68] sm:$0xff]   ;;  %p1427_p9 = scmp.ne.s32.totalorder %s1857_s10, %s1426_s19  ;;  %s1509_s28 = smov [#allocation10]  }
  0x71   : > { %641 = vmatpush1.bf16.msra.mxu0 %v1253_v43  ;;  %1124 = vmatprep.subr.bf16.mxu1 %v1272_v57  ;;  %v1277_v62 = vld [vmem:[#allocation8 + $0x28] sm:$0xff]   ;;  %v1278_v63 = vld [vmem:[#allocation8 + $0x60] sm:$0xff]   ;;  %s1430_s30 = sshll.u32 %s1509_s28, 4  ;;  %s1431_s30 = int_to_ptr.vmem [resolvable:$false] %s1430_s30 }
  0x72   : > { %642 = vmatprep.subr.bf16.mxu0 %v1254_v44  ;;  %1125 = vmatpush3.bf16.msra.mxu1 %v1273_v58  ;;  %p1428_p7 = pnand %p1427_p9, %p1932_p12  ;;  %s1432_s9 = scalar_lea.vmem %s1431_s30, 2048 }
  0x73   : > { %1126 = vmatprep.subr.bf16.mxu1 %v1274_v59  ;;  %p1433_p10 = scmp.lt.s32.totalorder %s1857_s10, %s1431_s30  ;;  %p1434_p13 = scmp.lt.s32.totalorder %s1432_s9, %s1426_s19 }
  0x74   : > { %362 = vadd.xlane.f32.xlu0 %v1734_v6  ;;  %364 = vadd.xlane.f32.xlu1 %v1736_v7  ;;  %p1429_p1 = pneg %p1428_p7 }
  0x75   : > { %643 = vmatpush1.bf16.msra.mxu0 %v1256_v45  ;;  %p1435_p2 = por %p1434_p13, %p1433_p10 }
  0x76   : > { %644 = vmatprep.subr.bf16.mxu0 %v1257_v46  ;;  %1127 = vmatpush3.bf16.msra.mxu1 %v1275_v60 }
  0x77   : > { %1128 = vmatprep.subr.bf16.mxu1 %v1276_v61  ;;  %p1436_p3 = pnand %p1435_p2, %p1429_p1 }
  0x79   : > { %645 = vmatpush1.bf16.msra.mxu0 %v1259_v47 }
  0x7a   : > { %646 = vmatprep.subr.bf16.mxu0 %v1260_v48  ;;  %1129 = vmatpush3.bf16.msra.mxu1 %v1277_v62 }
  0x7b   : > { %1130 = vmatprep.subr.bf16.mxu1 %v1278_v63 }
  0x7d   : > { %647 = vmatpush1.bf16.msra.mxu0 %v1262_v49 }
  0x7e   : > { %648 = vmatprep.subr.bf16.mxu0 %v1263_v50 }
  0x81   : > { %649 = vmatpush1.bf16.msra.mxu0 %v1265_v51 }
  0x82   : > { %650 = vmatprep.subr.bf16.mxu0 %v1266_v52 }
  0x85   : > { %651 = vmatpush1.bf16.msra.mxu0 %v1268_v53 }
  0x86   : > { %652 = vmatprep.subr.bf16.mxu0 %v1269_v54 }
  0x89   : > { %653 = vmatpush1.bf16.msra.mxu0 %v1271_v55 }
  0xf1   : > { %v351_v8 = vpop.xlane.xlu0 %350  ;;  %v355_v9 = vpop.xlane.xlu1 %354 }
  0xf2   : > { %v367_v10 = vmul.f32 0.0078125, %v351_v8  ;;  %v369_v11 = vmul.f32 0.0078125, %v355_v9  ;;  %v1279_v8 = vld [vmem:[#allocation8 + $0x20] sm:$0xff]   ;;  %v1280_v9 = vld [vmem:[#allocation8 + $0x58] sm:$0xff]  }
  0xf3   : > { %1131 = vmatpush3.bf16.msra.mxu1 %v1279_v8 }
  0xf4   : > { %v1743_v12 = vsub.f32 %v1718_v0, %v367_v10  ;;  %v1746_v13 = vsub.f32 %v1720_v1, %v369_v11  ;;  %v1281_v10 = vld [vmem:[#allocation8 + $0x18] sm:$0xff]   ;;  %1132 = vmatprep.subr.bf16.mxu1 %v1280_v9 }
  0xf5   : > { %v353_v14 = vpop.xlane.xlu0 %352  ;;  %v357_v15 = vpop.xlane.xlu1 %356 }
  0xf6   : > { %v368_v16 = vmul.f32 0.0078125, %v353_v14  ;;  %v383_v17 = vmul.f32 %v1743_v12, %v1743_v12  ;;  %v370_v18 = vmul.f32 0.0078125, %v357_v15  ;;  %v385_v20 = vmul.f32 %v1746_v13, %v1746_v13 }
  0xf7   : > { %1133 = vmatpush3.bf16.msra.mxu1 %v1281_v10 }
  0xf8   : > { %v1751_v19 = vsub.f32 %v1724_v2, %v368_v16  ;;  %391 = vadd.xlane.f32.xlu0 %v383_v17  ;;  %v1756_v21 = vsub.f32 %v1726_v3, %v370_v18 }
  0xf9   : > { %v359_v22 = vpop.xlane.xlu0 %358  ;;  %v361_v23 = vpop.xlane.xlu1 %360 }
  0xfa   : > { %v371_v24 = vmul.f32 0.0078125, %v359_v22  ;;  %v384_v25 = vmul.f32 %v1751_v19, %v1751_v19  ;;  %v372_v26 = vmul.f32 0.0078125, %v361_v23  ;;  %v386_v29 = vmul.f32 %v1756_v21, %v1756_v21 }
  0xfc   : > { %v1761_v27 = vsub.f32 %v1728_v4, %v371_v24  ;;  %395 = vadd.xlane.f32.xlu0 %v385_v20  ;;  %393 = vadd.xlane.f32.xlu1 %v384_v25  ;;  %v1764_v28 = vsub.f32 %v1730_v5, %v372_v26 }
  0xfd   : > { %v363_v30 = vpop.xlane.xlu0 %362  ;;  %v365_v31 = vpop.xlane.xlu1 %364 }
  0xfe   : > { %v373_v32 = vmul.f32 0.0078125, %v363_v30  ;;  %v387_v33 = vmul.f32 %v1761_v27, %v1761_v27  ;;  %v374_v34 = vmul.f32 0.0078125, %v365_v31  ;;  %v388_v36 = vmul.f32 %v1764_v28, %v1764_v28 }
 0x100   : > { %v1771_v35 = vsub.f32 %v1734_v6, %v373_v32  ;;  %397 = vadd.xlane.f32.xlu1 %v386_v29  ;;  %399 = vadd.xlane.f32.xlu0 %v387_v33  ;;  %v1776_v37 = vsub.f32 %v1736_v7, %v374_v34 }
 0x102   : > { %v389_v38 = vmul.f32 %v1771_v35, %v1771_v35  ;;  %v390_v39 = vmul.f32 %v1776_v37, %v1776_v37 }
 0x104   : > { %401 = vadd.xlane.f32.xlu1 %v388_v36  ;;  %403 = vadd.xlane.f32.xlu0 %v389_v38 }
 0x108   : > { %405 = vadd.xlane.f32.xlu1 %v390_v39 }
 0x181   : > { %v392_v11 = vpop.xlane.xlu0 %391 }
 0x182   : > { %v408_v14 = vmul.f32 0.007874016, %v392_v11 }
 0x184   : > { %1288 = vrsqrt.f32 %v408_v14  ;;  %vm418_vm0 = vcmp.eq.f32.partialorder %v408_v14, inf  ;;  %v421_v36 = vand.u32 2147483648, %v408_v14  ;;  %vm420_vm1 = vcmp.eq.f32.partialorder %v408_v14, 0.0 }
 0x185   : > { %v394_v15 = vpop.xlane.xlu1 %393  ;;  %v396_v16 = vpop.xlane.xlu0 %395 }
 0x186   : > { %v409_v17 = vmul.f32 0.007874016, %v394_v15  ;;  %v410_v18 = vmul.f32 0.007874016, %v396_v16 }
 0x188   : > { %1290 = vrsqrt.f32 %v409_v17  ;;  %vm425_vm2 = vcmp.eq.f32.partialorder %v409_v17, inf  ;;  %vm427_vm3 = vcmp.eq.f32.partialorder %v409_v17, 0.0  ;;  %v428_v44 = vand.u32 2147483648, %v409_v17 }
 0x189   : > { %1292 = vrsqrt.f32 %v410_v18  ;;  %v398_v20 = vpop.xlane.xlu1 %397  ;;  %v400_v22 = vpop.xlane.xlu0 %399  ;;  %vm432_vm4 = vcmp.eq.f32.partialorder %v410_v18, inf  ;;  %vm434_vm5 = vcmp.eq.f32.partialorder %v410_v18, 0.0  ;;  %v435_v47 = vand.u32 2147483648, %v410_v18 }
 0x18a   : > { %v411_v23 = vmul.f32 0.007874016, %v398_v20  ;;  %v412_v24 = vmul.f32 0.007874016, %v400_v22 }
 0x18c   : > { %1294 = vrsqrt.f32 %v411_v23  ;;  %vm439_vm6 = vcmp.eq.f32.partialorder %v411_v23, inf  ;;  %vm441_vm7 = vcmp.eq.f32.partialorder %v411_v23, 0.0  ;;  %v442_v55 = vand.u32 2147483648, %v411_v23 }
 0x18d   : > { %1296 = vrsqrt.f32 %v412_v24  ;;  %v402_v25 = vpop.xlane.xlu1 %401  ;;  %v404_v26 = vpop.xlane.xlu0 %403  ;;  %vm446_vm8 = vcmp.eq.f32.partialorder %v412_v24, inf  ;;  %vm448_vm9 = vcmp.eq.f32.partialorder %v412_v24, 0.0  ;;  %v449_v60 = vand.u32 2147483648, %v412_v24 }
 0x18e   : > { %v1783_v29 = vmul.f32 0.007874016, %v402_v25  ;;  %v1785_v30 = vmul.f32 0.007874016, %v404_v26 }
 0x190   : > { %1298 = vrsqrt.f32 %v1783_v29  ;;  %vm453_vm10 = vcmp.eq.f32.partialorder %v1783_v29, inf  ;;  %vm460_vm11 = vcmp.eq.f32.partialorder %v1785_v30, inf  ;;  %v456_v16 = vand.u32 2147483648, %v1783_v29 }
 0x191   : > { %v1289_v31 = vpop.eup %1288  ;;  %1300 = vrsqrt.f32 %v1785_v30  ;;  %v406_v32 = vpop.xlane.xlu1 %405  ;;  %vm462_vm12 = vcmp.eq.f32.partialorder %v1785_v30, 0.0  ;;  %vm455_vm13 = vcmp.eq.f32.partialorder %v1783_v29, 0.0 }
 0x192   : > { %v417_v33 = vmul.f32 %v1289_v31, %v408_v14  ;;  %v1789_v34 = vmul.f32 0.007874016, %v406_v32  ;;  %v1082_v31 = vld [vmem:[%s1903_s1] ss:$0 sm:$0xff] }
 0x194   : > { %v419_v38 = vsel %vm418_vm0, %v408_v14, %v417_v33  ;;  %1302 = vrsqrt.f32 %v1789_v34  ;;  %v463_v14 = vand.u32 2147483648, %v1785_v30  ;;  %vm467_vm14 = vcmp.eq.f32.partialorder %v1789_v34, inf }
 0x195   : > { %v1291_v39 = vpop.eup %1290  ;;  %v422_v40 = vsel %vm420_vm1, %v421_v36, %v419_v38  ;;  %vm469_vm15 = vcmp.eq.f32.partialorder %v1789_v34, 0.0  ;;  %v495_v38 = vmul.f32 %v1082_v31, %v1743_v12  ;;  %v499_v12 = vmul.f32 %v1082_v31, %v1761_v27 }
 0x196   : > { %v1293_v41 = vpop.eup %1292  ;;  %v472_v42 = vadd.f32 1e-06, %v422_v40  ;;  %v424_v43 = vmul.f32 %v1291_v39, %v409_v17  ;;  %v496_v40 = vmul.f32 %v1082_v31, %v1751_v19  ;;  %v500_v19 = vmul.f32 %v1082_v31, %v1764_v28 }
 0x197   : > { %v431_v45 = vmul.f32 %v1293_v41, %v410_v18 }
 0x198   : > { %1304 = vrcp.f32 %v472_v42  ;;  %v426_v46 = vsel %vm425_vm2, %v409_v17, %v424_v43  ;;  %v1083_v43 = vld [vmem:[#allocation5] ss:$0 sm:$0xff] }
 0x199   : > { %v1295_v48 = vpop.eup %1294  ;;  %v429_v49 = vsel %vm427_vm3, %v428_v44, %v426_v46  ;;  %v433_v50 = vsel %vm432_vm4, %v410_v18, %v431_v45  ;;  %v497_v45 = vmul.f32 %v1082_v31, %v1746_v13 }
 0x19a   : > { %v1297_v51 = vpop.eup %1296  ;;  %v473_v52 = vadd.f32 1e-06, %v429_v49  ;;  %v436_v53 = vsel %vm434_vm5, %v435_v47, %v433_v50  ;;  %v438_v54 = vmul.f32 %v1295_v48, %v411_v23  ;;  %v498_v47 = vmul.f32 %v1082_v31, %v1756_v21 }
 0x19b   : > { %v474_v57 = vadd.f32 1e-06, %v436_v53  ;;  %v445_v58 = vmul.f32 %v1297_v51, %v412_v24  ;;  %v501_v21 = vmul.f32 %v1082_v31, %v1771_v35  ;;  %v1282_v35 = vld [vmem:[#allocation8 + $0x50] sm:$0xff]  }
 0x19c   : > { %1306 = vrcp.f32 %v473_v52  ;;  %v440_v59 = vsel %vm439_vm6, %v411_v23, %v438_v54  ;;  %1134 = vmatprep.subr.bf16.mxu1 %v1282_v35 }
 0x19d   : > { %v1299_v61 = vpop.eup %1298  ;;  %1308 = vrcp.f32 %v474_v57  ;;  %v443_v62 = vsel %vm441_vm7, %v442_v55, %v440_v59  ;;  %v447_v63 = vsel %vm446_vm8, %v412_v24, %v445_v58 }
 0x19e   : > { %v1301_v8 = vpop.eup %1300  ;;  %v475_v9 = vadd.f32 1e-06, %v443_v62  ;;  %v450_v10 = vsel %vm448_vm9, %v449_v60, %v447_v63  ;;  %v452_v11 = vmul.f32 %v1299_v61, %v1783_v29  ;;  %v502_v61 = vmul.f32 %v1082_v31, %v1776_v37  ;;  %v1284_v37 = vld [vmem:[#allocation8 + $0x48] sm:$0xff]  }
 0x19f   : > { %v476_v15 = vadd.f32 1e-06, %v450_v10  ;;  %v459_v17 = vmul.f32 %v1301_v8, %v1785_v30 }
 0x1a0   : > { %1310 = vrcp.f32 %v475_v9  ;;  %v454_v18 = vsel %vm453_vm10, %v1783_v29, %v452_v11  ;;  %v470_v29 = vand.u32 2147483648, %v1789_v34 }
 0x1a1   : > { %v1303_v20 = vpop.eup %1302  ;;  %1312 = vrcp.f32 %v476_v15  ;;  %v457_v22 = vsel %vm455_vm13, %v456_v16, %v454_v18  ;;  %v461_v23 = vsel %vm460_vm11, %v1785_v30, %v459_v17  ;;  %v1283_v15 = vld [vmem:[#allocation8 + $0x10] sm:$0xff]   ;;  %v1285_v16 = vld [vmem:[#allocation8 + $0x8] sm:$0xff]   ;;  %v1286_v17 = vld [vmem:[#allocation8 + $0x40] sm:$0xff]  }
 0x1a2   : > { %v477_v24 = vadd.f32 1e-06, %v457_v22  ;;  %v464_v25 = vsel %vm462_vm12, %v463_v14, %v461_v23  ;;  %v466_v26 = vmul.f32 %v1303_v20, %v1789_v34  ;;  %1135 = vmatpush3.bf16.msra.mxu1 %v1283_v15  ;;  %v1287_v18 = vld [vmem:[#allocation8] sm:$0xff]   ;;  %v548_v20 = vlaneseq }
 0x1a3   : > { %v478_v32 = vadd.f32 1e-06, %v464_v25  ;;  %1136 = vmatprep.subr.bf16.mxu1 %v1284_v37 }
 0x1a4   : > { %1314 = vrcp.f32 %v477_v24  ;;  %v468_v33 = vsel %vm467_vm14, %v1789_v34, %v466_v26  ;;  %v549_v22 = vshrl.u32 %v548_v20, 7 }
 0x1a5   : > { %v1305_v36 = vpop.eup %1304  ;;  %1316 = vrcp.f32 %v478_v32  ;;  %v471_v30 = vsel %vm469_vm15, %v470_v29, %v468_v33 }
 0x1a6   : > { %v479_v39 = vadd.f32 1e-06, %v471_v30  ;;  %v503_v41 = vmul.f32 %v1305_v36, %v495_v38  ;;  %1137 = vmatpush3.bf16.msra.mxu1 %v1285_v16  ;;  %v554_v23 = vsub.s32 1, %v549_v22  ;;  %v550_v24 = vsub.s32 0, %v549_v22 }
 0x1a7   : > { %1138 = vmatprep.subr.bf16.mxu1 %v1286_v17 }
 0x1a8   : > { %1318 = vrcp.f32 %v479_v39  ;;  %v518_v48 = vadd.f32 %v1083_v43, %v503_v41 }
 0x1a9   : > { %v1307_v42 = vpop.eup %1306 }
 0x1aa   : > { %v1309_v44 = vpop.eup %1308  ;;  %v504_v46 = vmul.f32 %v1307_v42, %v496_v40  ;;  %1139 = vmatpush3.bf16.msra.mxu1 %v1287_v18 }
 0x1ab   : > { %v505_v49 = vmul.f32 %v1309_v44, %v497_v45 }
 0x1ac   : > { %v519_v34 = vadd.f32 %v1083_v43, %v504_v46 }
 0x1ad   : > { %v1311_v50 = vpop.eup %1310  ;;  %v520_v54 = vadd.f32 %v1083_v43, %v505_v49 }
 0x1ae   : > { %v1313_v51 = vpop.eup %1312  ;;  %v526_v52 = vpack.c.bf16 %v519_v34, %v518_v48  ;;  %v506_v53 = vmul.f32 %v1311_v50, %v498_v47 }
 0x1af   : > { %v507_v57 = vmul.f32 %v1313_v51, %v499_v12 }
 0x1b0   : > { %671 = vmatmul.mubr.bf16.vlgmr.msra.gmra.mxu0 %v526_v52  ;;  %v521_v55 = vadd.f32 %v1083_v43, %v506_v53 }
 0x1b1   : > { %v1315_v58 = vpop.eup %1314  ;;  %680 = vmatprep.mubr.bf16.mxu0 %v1508_v56  ;;  %v522_v62 = vadd.f32 %v1083_v43, %v507_v57 }
 0x1b2   : > { %v1317_v13 = vpop.eup %1316  ;;  %v527_v59 = vpack.c.bf16 %v521_v55, %v520_v54  ;;  %v508_v60 = vmul.f32 %v1315_v58, %v500_v19 }
 0x1b3   : > { %v509_v63 = vmul.f32 %v1317_v13, %v501_v21 }
 0x1b4   : > { %v523_v27 = vadd.f32 %v1083_v43, %v508_v60 }
 0x1b5   : > { %v1319_v8 = vpop.eup %1318  ;;  %v524_v10 = vadd.f32 %v1083_v43, %v509_v63 }
 0x1b6   : > { %v528_v9 = vpack.c.bf16 %v523_v27, %v522_v62  ;;  %v510_v28 = vmul.f32 %v1319_v8, %v502_v61 }
 0x1b8   : > { %681 = vmatmul.mubr.bf16.gmra.mxu0 %v527_v59  ;;  %v525_v11 = vadd.f32 %v1083_v43, %v510_v28 }
 0x1b9   : > { %690 = vmatprep.mubr.bf16.mxu0 %v1508_v56 }
 0x1ba   : > { %v529_v14 = vpack.c.bf16 %v525_v11, %v524_v10 }
 0x1c0   : > { %691 = vmatmul.mubr.bf16.gmra.mxu0 %v528_v9 }
 0x1c1   : > { %700 = vmatprep.mubr.bf16.mxu0 %v1508_v56  ;;  %v546_v56 = vld [vmem:[%s1906_s4] sm:$0x3] }
 0x1c2   : > { %v555_v26 = vrot.slane %v546_v56, %v554_v23  ;;  %v551_v31 = vrot.slane %v546_v56, %v550_v24 }
 0x1c8   : > { %701 = vmatmul.mubr.bf16.gmra.mxu0 %v529_v14 }
 0x270   : > { %v672_v25 = vpop.f32.mrf.mxu0 }
 0x271   : > { %v673_v30 = vadd.f32 %v672_v25, %v551_v31 }
 0x272   : > { %v674_v32 = vpop.f32.mrf.mxu0 }
 0x273   : > { %v675_v33 = vadd.f32 %v674_v32, %v555_v26  ;;  %v711_v44 = vmax.f32 %v673_v30, 0.0 }
 0x274   : > { %v676_v29 = vpop.f32.mrf.mxu0 }
 0x275   : > { %v677_v36 = vadd.f32 %v676_v29, %v551_v31  ;;  %v712_v42 = vmax.f32 %v675_v33, 0.0  ;;  %v1100_v33 = vld [vmem:[%s1908_s6] ss:$0 sm:$0xff] }
 0x276   : > { %v678_v38 = vpop.f32.mrf.mxu0 }
 0x277   : > { %v679_v39 = vadd.f32 %v678_v38, %v555_v26  ;;  %v713_v40 = vmax.f32 %v677_v36, 0.0 }
 0x278   : > { %v682_v41 = vpop.f32.mrf.mxu0 }
 0x279   : > { %v714_v43 = vmax.f32 %v679_v39, 0.0  ;;  %v727_v47 = vpack.c.bf16 %v713_v40, %v711_v44  ;;  %v683_v50 = vadd.f32 %v682_v41, %v551_v31 }
 0x27a   : > { %v684_v45 = vpop.f32.mrf.mxu0 }
 0x27b   : > { %v728_v46 = vpack.c.bf16 %v714_v43, %v712_v42  ;;  %v685_v34 = vadd.f32 %v684_v45, %v555_v26  ;;  %v715_v55 = vmax.f32 %v683_v50, 0.0 }
 0x27c   : > { %v686_v48 = vpop.f32.mrf.mxu0 }
 0x27d   : > { %v687_v49 = vadd.f32 %v686_v48, %v551_v31  ;;  %902 = vmatprep.mubr.bf16.mxu1 %v728_v46  ;;  %v716_v19 = vmax.f32 %v685_v34, 0.0 }
 0x27e   : > { %v688_v51 = vpop.f32.mrf.mxu0  ;;  %903 = vmatmul.mubr.bf16.vlgmr.msra.gmra.mxu1 %v727_v47 }
 0x27f   : > { %v689_v12 = vadd.f32 %v688_v51, %v555_v26  ;;  %v717_v52 = vmax.f32 %v687_v49, 0.0 }
 0x280   : > { %v692_v53 = vpop.f32.mrf.mxu0 }
 0x281   : > { %v718_v54 = vmax.f32 %v689_v12, 0.0  ;;  %v729_v13 = vpack.c.bf16 %v717_v52, %v715_v55  ;;  %v693_v61 = vadd.f32 %v692_v53, %v551_v31 }
 0x282   : > { %v694_v57 = vpop.f32.mrf.mxu0 }
 0x283   : > { %v730_v58 = vpack.c.bf16 %v718_v54, %v716_v19  ;;  %v695_v59 = vadd.f32 %v694_v57, %v555_v26  ;;  %v719_v10 = vmax.f32 %v693_v61, 0.0 }
 0x284   : > { %v696_v21 = vpop.f32.mrf.mxu0 }
 0x285   : > { %v697_v60 = vadd.f32 %v696_v21, %v551_v31  ;;  %910 = vmatprep.mubr.bf16.mxu1 %v730_v58  ;;  %v720_v9 = vmax.f32 %v695_v59, 0.0 }
 0x286   : > { %v698_v62 = vpop.f32.mrf.mxu0  ;;  %911 = vmatmul.mubr.bf16.gmra.mxu1 %v729_v13 }
 0x287   : > { %v699_v27 = vadd.f32 %v698_v62, %v555_v26  ;;  %v721_v63 = vmax.f32 %v697_v60, 0.0 }
 0x288   : > { %v702_v8 = vpop.f32.mrf.mxu0 }
 0x289   : > { %v722_v28 = vmax.f32 %v699_v27, 0.0  ;;  %v731_v35 = vpack.c.bf16 %v721_v63, %v719_v10  ;;  %v703_v17 = vadd.f32 %v702_v8, %v551_v31 }
 0x28a   : > { %v704_v11 = vpop.f32.mrf.mxu0 }
 0x28b   : > { %v732_v14 = vpack.c.bf16 %v722_v28, %v720_v9  ;;  %v705_v37 = vadd.f32 %v704_v11, %v555_v26  ;;  %v723_v56 = vmax.f32 %v703_v17, 0.0 }
 0x28c   : > { %v706_v15 = vpop.f32.mrf.mxu0 }
 0x28d   : > { %v707_v16 = vadd.f32 %v706_v15, %v551_v31  ;;  %918 = vmatprep.mubr.bf16.mxu1 %v732_v14  ;;  %v724_v23 = vmax.f32 %v705_v37, 0.0 }
 0x28e   : > { %v708_v18 = vpop.f32.mrf.mxu0  ;;  %919 = vmatmul.mubr.bf16.gmra.mxu1 %v731_v35 }
 0x28f   : > { %v709_v20 = vadd.f32 %v708_v18, %v555_v26  ;;  %v725_v22 = vmax.f32 %v707_v16, 0.0 }
 0x291   : > { %v726_v24 = vmax.f32 %v709_v20, 0.0  ;;  %v733_v32 = vpack.c.bf16 %v725_v22, %v723_v56 }
 0x293   : > { %v734_v25 = vpack.c.bf16 %v726_v24, %v724_v23 }
 0x295   : > { %926 = vmatprep.mubr.bf16.mxu1 %v734_v25 }
 0x296   : > { %927 = vmatmul.mubr.bf16.gmra.mxu1 %v733_v32 }
 0x33e   : > { %v1140_v29 = vpop.f32.mrf.mxu1 }
 0x340   : > { %v1141_v36 = vpop.f32.mrf.mxu1 }
 0x341   : > { %v1142_v30 = vadd.f32 %v1141_v36, %v1140_v29 }
 0x342   : > { %v1143_v31 = vpop.f32.mrf.mxu1 }
 0x343   : > { %v905_v38 = vadd.f32 %v1142_v30, %v1100_v33 }
 0x344   : > { %v1144_v39 = vpop.f32.mrf.mxu1 }
 0x345   : > { %v935_v26 = vadd.f32 %v905_v38, %v1718_v0  ;;  %v1145_v40 = vadd.f32 %v1144_v39, %v1143_v31 }
 0x346   : > { %v1146_v41 = vpop.f32.mrf.mxu1 }
 0x347   : > { %943 = vst [vmem:[%s1835_s15] sm:$0xff] %v935_v26  ;;  %v908_v42 = vadd.f32 %v1145_v40, %v1100_v33 }
 0x348   : > { %v1147_v43 = vpop.f32.mrf.mxu1 }
 0x349   : > { %v936_v44 = vadd.f32 %v908_v42, %v1724_v2  ;;  %v1148_v45 = vadd.f32 %v1147_v43, %v1146_v41 }
 0x34a   : > { %v1149_v46 = vpop.f32.mrf.mxu1 }
 0x34b   : > { %944 = vst [vmem:[%s1835_s15 + $0x8] sm:$0xff] %v936_v44  ;;  %v913_v47 = vadd.f32 %v1148_v45, %v1100_v33 }
 0x34c   : > { %v1150_v48 = vpop.f32.mrf.mxu1 }
 0x34d   : > { %v937_v0 = vadd.f32 %v913_v47, %v1720_v1  ;;  %v1151_v34 = vadd.f32 %v1150_v48, %v1149_v46 }
 0x34e   : > { %v1152_v49 = vpop.f32.mrf.mxu1 }
 0x34f   : > { %945 = vst [vmem:[%s1835_s15 + $0x10] sm:$0xff] %v937_v0  ;;  %v916_v50 = vadd.f32 %v1151_v34, %v1100_v33 }
 0x350   : > { %v1153_v51 = vpop.f32.mrf.mxu1 }
 0x351   : > { %v938_v12 = vadd.f32 %v916_v50, %v1726_v3  ;;  %v1154_v52 = vadd.f32 %v1153_v51, %v1152_v49 }
 0x352   : > { %v1155_v53 = vpop.f32.mrf.mxu1 }
 0x353   : > { %946 = vst [vmem:[%s1835_s15 + $0x18] sm:$0xff] %v938_v12  ;;  %v921_v2 = vadd.f32 %v1154_v52, %v1100_v33 }
 0x354   : > { %v1156_v19 = vpop.f32.mrf.mxu1 }
 0x355   : > { %v939_v54 = vadd.f32 %v921_v2, %v1728_v4  ;;  %v1157_v55 = vadd.f32 %v1156_v19, %v1155_v53 }
 0x356   : > { %v1158_v1 = vpop.f32.mrf.mxu1 }
 0x357   : > { %947 = vst [vmem:[%s1835_s15 + $0x20] sm:$0xff] %v939_v54  ;;  %v924_v57 = vadd.f32 %v1157_v55, %v1100_v33 }
 0x358   : > { %v1159_v58 = vpop.f32.mrf.mxu1 }
 0x359   : > { %v940_v13 = vadd.f32 %v924_v57, %v1730_v5  ;;  %v1160_v3 = vadd.f32 %v1159_v58, %v1158_v1 }
 0x35a   : > { %v1161_v21 = vpop.f32.mrf.mxu1 }
 0x35b   : > { %948 = vst [vmem:[%s1835_s15 + $0x28] sm:$0xff] %v940_v13  ;;  %v929_v59 = vadd.f32 %v1160_v3, %v1100_v33 }
 0x35c   : > { %v1162_v60 = vpop.f32.mrf.mxu1 }
 0x35d   : > { %v941_v61 = vadd.f32 %v929_v59, %v1734_v6  ;;  %v1163_v62 = vadd.f32 %v1162_v60, %v1161_v21 }
 0x35f   : > { %949 = vst [vmem:[%s1835_s15 + $0x30] sm:$0xff] %v941_v61  ;;  %v932_v4 = vadd.f32 %v1163_v62, %v1100_v33 }
 0x361   : > { %v942_v5 = vadd.f32 %v932_v4, %v1736_v7 }
 0x363   : > { %950 = vst [vmem:[%s1835_s15 + $0x38] sm:$0xff] %v942_v5 }
 0x364   : > { %1439 = shalt.err (!%p1436_p3)
}
 0x365   : > { %s1440_s13 = scalar_lea.hbm %s1855_s2, 1024  ;;  %s1444_s12 = scalar_lea.hbm %s1909_s7, 2048 }
 0x366   : > { %p1441_p6 = scmp.ne.s32.totalorder %s1855_s2, %s1440_s13  ;;  %p1445_p0 = scmp.lt.s32.totalorder %s1855_s2, %s1909_s7 }
 0x367   : > { %p1446_p11 = scmp.lt.s32.totalorder %s1444_s12, %s1440_s13 }
 0x368   : > { %p1442_p4 = pnand %p1441_p6, %p1932_p12 }
 0x369   : > { %p1447_p5 = por %p1446_p11, %p1445_p0 }
 0x36a   : > { %p1443_p8 = pneg %p1442_p4 }
 0x36c   : > { %p1448_p9 = pnand %p1447_p5, %p1443_p8 }
 0x36e   : > { %1451 = shalt.err (!%p1448_p9)
}
 0x36f   : > { %s1510_s22 = smov 128   ;;  %s1511_s11 = smov 8  }
 0x370   : > { %1178 = dma.vmem_to_hbm [thread:$0]  (%p1932_p12), %s1857_s10, 1024, %s1855_s2, %s952_s16, %s1510_s22, %s1510_s22, %s1511_s11  }
 0x371 PF: > { %s980_s19 = sand.u32 1, %s1486_s24   ;;  %p1933_p7 = scmp.ne.s32.totalorder %s1918_s8, 0 }
 0x372   : > { %p1934_p1 = scmp.ge.s32.totalorder %s1498_s27, 2  ;;  %s981_s28 = scalar_lea.sflag [#allocation4], %s980_s19 }
 0x374   : > { %p1195_p10 = pnand %p1934_p1, %p1933_p7 }
 0x376   : > { %p1196_p13 = pneg %p1195_p10 }
 0x378   : > { %1481 = dma.done.wait (%p1196_p13), %s981_s28, 1024  }
 0x379   : > { %1483 = vsyncadd (%p1196_p13), %s981_s28, 4294966272  ;;  %p22_p2 = scmp.ge.s32.totalorder %s1642_s18, 4   ;;  %s1935_s24 = smov %s1490_s25 }
 0x37a   : > { %s1936_s25 = smov %s1494_s26  ;;  %s1937_s26 = smov %s1652_s21 }
 0x37b   : > { %s1938_s27 = smov %s1642_s18  ;;  %24 = sbr.rel (!%p22_p2) target bundleno = 9 (0x9), region = 105 }
 0x380   :  { %986 = vsyncpa [#allocation3], 1 }
 0x381   :  { %988 = vsyncpa [#allocation3 + $0x1], 1 }
 0x382   :  { %989 = vsyncpa [#allocation6], 1 }
 0x383   :  { %990 = vsyncpa [#allocation9], 1 }
 0x384   :  { %991 = vsyncpa [#allocation4], 1 }
 0x385   :  { %993 = vsyncpa [#allocation4 + $0x1], 1 }

// kernel: tpu_custom_call.1
= control target key start
LH: loop header
LB: loop body
LE: loop exit
PB: predicated region body
PF: predicated region fallthrough
CT: control target
= control target key end

     0   :  { %s1902_s0 = inlined_call_operand.hbm [shape: f32[128,128], index: 0, kind: input, shape index: {}]   ;;  %s1903_s1 = inlined_call_operand.vmem [shape: f32[1,128], index: 1, kind: input, shape index: {}]   ;;  %s1904_s2 = inlined_call_operand.hbm [shape: f32[1,128], index: 2, kind: input, shape index: {}]   ;;  %s1905_s3 = inlined_call_operand.hbm [shape: bf16[128,256], index: 3, kind: input, shape index: {}]   ;;  %s1906_s4 = inlined_call_operand.vmem [shape: f32[1,256], index: 4, kind: input, shape index: {}]   ;;  %s1907_s5 = inlined_call_operand.hbm [shape: bf16[256,128], index: 5, kind: input, shape index: {}]   ;;  %s1908_s6 = inlined_call_operand.vmem [shape: f32[1,128], index: 6, kind: input, shape index: {}]   ;;  %s1909_s7 = inlined_call_operand.hbm [shape: f32[128,128], index: 7, kind: output, shape index: {}]  }
   0x1   :  { %1916 = sst [smem:[#allocation15_spill]] %s1904_s2 }
   0x2   :  { %12 = vsyncpa [#allocation3], 0 }
   0x3   :  { %14 = vsyncpa [#allocation3 + $0x1], 0 }
   0x4   :  { %15 = vsyncpa [#allocation6], 0 }
   0x5   :  { %16 = vsyncpa [#allocation9], 0 }
   0x6   :  { %17 = vsyncpa [#allocation4], 0 }
   0x7   :  { %19 = vsyncpa [#allocation4 + $0x1], 0  ;;  %s1552_s24 = smov 0   ;;  %s1554_s25 = smov 0  }
   0x8   :  { %s1556_s26 = smov 0   ;;  %s1558_s27 = smov 0  }
   0x9 LB: > { %s1573_s28 = sadd.s32 4294967295, %s1498_s27   ;;  %s1067_s29 = sadd.s32 4294967294, %s1498_s27   ;;  %s1498_s27 = sphi %s1558_s27, %s1938_s27   ;;  %s1494_s26 = sphi %s1556_s26, %s1937_s26   ;;  %s1490_s25 = sphi %s1554_s25, %s1936_s25   ;;  %s1486_s24 = sphi %s1552_s24, %s1935_s24  }
   0xa   : > { %p45_p0 = scmp.ne.s32.totalorder %s1490_s25, %s1486_s24  ;;  %p1910_p1 = scmp.eq.s32.totalorder %s1573_s28, 0 }
   0xb   : > { %p195_p2 = scmp.eq.s32.totalorder %s1573_s28, 1  ;;  %p201_p3 = scmp.eq.s32.totalorder %s1067_s29, 1 }
   0xc   : > { %p1582_p4 = por %p1910_p1, %p45_p0  ;;  %p1068_p5 = scmp.ge.s32.totalorder %s1498_s27, 1 }
   0xd   : > { %p1587_p6 = por %p201_p3, %p45_p0  ;;  %p208_p7 = scmp.lt.s32.totalorder %s1498_s27, 3 }
   0xe   : > { %s1917_s30 = scalar_select %p1582_p4, 1, 0 }
   0xf   : > { %s1918_s8 = scalar_select %p1587_p6, 1, 0 }
  0x10   : > { %p1592_p8 = pnand %p1068_p5, %p208_p7  ;;  %s1500_s10 = smov [#allocation5]  }
  0x11   : > { %s224_s11 = sshll.u32 %s1500_s10, 4  ;;  %s1501_s12 = smov [#allocation7]   ;;  %s225_s11 = int_to_ptr.vmem [resolvable:$true] %s224_s11 }
  0x12   : > { %s1919_s9 = scalar_select %p1592_p8, 1, 0 }
  0x13   : > { %p1180_p10 = pneg %p1592_p8  ;;  %s234_s13 = sshll.u32 %s1501_s12, 4  ;;  %s1605_s13 = int_to_ptr.vmem [resolvable:$true] %s234_s13 }
  0x14   : > { %s1502_s15 = smov [#allocation8]   ;;  %s1331_s17 = scalar_lea.vmem %s225_s11, 16 }
  0x15   : > { %p1601_p11 = pnand %p1180_p10, %p1910_p1  ;;  %s250_s16 = sshll.u32 %s1502_s15, 4  ;;  %s251_s16 = int_to_ptr.vmem [resolvable:$true] %s250_s16 }
  0x16   : > { %p1332_p13 = scmp.ne.s32.totalorder %s225_s11, %s1331_s17  ;;  %s1338_s18 = scalar_lea.vmem %s225_s11, 32 }
  0x17   : > { %p1322_p12 = pneg %p1601_p11  ;;  %p1339_p5 = scmp.lt.s32.totalorder %s225_s11, %s225_s11 }
  0x18   : > { %p1340_p7 = scmp.lt.s32.totalorder %s1338_s18, %s1331_s17 }
  0x19   : > { %p1334_p0 = pnand %p1332_p13, %p1322_p12 }
  0x1a   : > { %p1341_p10 = por %p1340_p7, %p1339_p5 }
  0x1b   : > { %p1335_p3 = pneg %p1334_p0 }
  0x1d   : > { %p1342_p9 = pnand %p1341_p10, %p1335_p3 }
  0x1f   : > { %1345 = shalt.err (!%p1342_p9)
}
  0x20   : > { %s1921_s2 = sld [smem:[#allocation15_spill]]  ;;  %s1357_s21 = scalar_lea.vmem %s1605_s13, 2048 }
  0x21   : > { %p1358_p1 = scmp.ne.s32.totalorder %s1605_s13, %s1357_s21  ;;  %p1365_p5 = scmp.lt.s32.totalorder %s1605_s13, %s1605_s13 }
  0x22   : > { %p1366_p3 = scmp.lt.s32.totalorder %s1357_s21, %s1357_s21 }
  0x23   : > { %p1360_p13 = pnand %p1358_p1, %p1322_p12 }
  0x24   : > { %p1367_p9 = por %p1366_p3, %p1365_p5 }
  0x25   : > { %p1361_p0 = pneg %p1360_p13 }
  0x26   : > { %1183 = dma.hbm_to_vmem [thread:$0]  (!%p1601_p11), %s1921_s2, 16, %s225_s11, [#allocation6]  }
  0x27   : > { %p1368_p7 = pnand %p1367_p9, %p1361_p0 }
  0x29   : > { %1371 = shalt.err (!%p1368_p7)
}
  0x2a   : > { %s1911_s22 = smov 128   ;;  %s1912_s23 = smov 8  }
  0x2b   : > { %1186 = dma.hbm_to_vmem [thread:$0]  (!%p1601_p11), %s1905_s3, 2048, %s1605_s13, [#allocation6], %s1911_s22, %s1911_s22, %s1912_s23  }
  0x2c   : > { %s1383_s11 = scalar_lea.vmem %s251_s16, 2048  ;;  %p1391_p0 = scmp.lt.s32.totalorder %s251_s16, %s251_s16 }
  0x2d   : > { %p1384_p1 = scmp.ne.s32.totalorder %s251_s16, %s1383_s11  ;;  %p1392_p5 = scmp.lt.s32.totalorder %s1383_s11, %s1383_s11 }
  0x2f   : > { %p1386_p10 = pnand %p1384_p1, %p1322_p12  ;;  %p1393_p3 = por %p1392_p5, %p1391_p0 }
  0x31   : > { %p1387_p13 = pneg %p1386_p10 }
  0x33   : > { %p1394_p9 = pnand %p1393_p3, %p1387_p13 }
  0x35   : > { %1397 = shalt.err (!%p1394_p9)
}
  0x36   : > { %s1505_s12 = smov 64   ;;  %s1506_s13 = smov 4  }
  0x37   : > { %1189 = dma.hbm_to_vmem [thread:$0]  (!%p1601_p11), %s1907_s5, 2048, %s251_s16, [#allocation9], %s1505_s12, %s1505_s12, %s1506_s13  }
  0x38   : > { %s1642_s18 = sadd.s32 1, %s1498_s27   ;;  %s32_s20 = sadd.s32 1, %s1494_s26 }
  0x39   : > { %s29_s19 = ssub.s32 %s1498_s27, %s1642_s18  ;;  %p39_p7 = scmp.ne.s32.totalorder %s1494_s26, %s1490_s25 }
  0x3a   : > { %p30_p12 = scmp.eq.s32.totalorder %s29_s19, 0  ;;  %p40_p1 = scmp.eq.s32.totalorder %s1498_s27, 0 }
  0x3b   : > { %p1201_p10 = scmp.lt.s32.totalorder %s1498_s27, 2  ;;  %p1656_p0 = por %p195_p2, %p39_p7 }
  0x3c   : > { %s1652_s21 = scalar_select %p30_p12, %s1494_s26, %s32_s20  }
  0x3d   : > { %p41_p13 = por %p40_p1, %p39_p7  ;;  %s267_s14 = sand.u32 1, %s1494_s26  }
  0x3e   : > { %s1922_s29 = scalar_select %p1656_p0, 1, 0 }
  0x3f   : > { %s1122_s10 = sshll.u32 %s1498_s27, 10  ;;  %s1073_s16 = sshll.u32 %s267_s14, 6 }
  0x40   : > { %s1665_s13 = scalar_lea.hbm %s1902_s0, %s1122_s10  ;;  %s271_s15 = scalar_lea.vmem [#allocation2], %s1073_s16 }
  0x41   : > { %s278_s17 = sshll.u32 %s271_s15, 4  ;;  %p1667_p11 = pnand %p1201_p10, %p41_p13  ;;  %s1671_s17 = int_to_ptr.vmem [resolvable:$true] %s278_s17 }
  0x42   : > { %s1673_s20 = scalar_lea.sflag [#allocation3], %s267_s14  ;;  %s1398_s22 = scalar_lea.hbm %s1665_s13, 1024 }
  0x43   : > { %p1399_p2 = scmp.ne.s32.totalorder %s1665_s13, %s1398_s22  ;;  %p1400_p5 = pneg %p1667_p11 }
  0x44   : > { %s1403_s16 = scalar_lea.hbm %s1902_s0, 2048  ;;  %p1404_p12 = scmp.lt.s32.totalorder %s1665_s13, %s1902_s0 }
  0x45   : > { %p1401_p3 = pnand %p1400_p5, %p1399_p2  ;;  %p1405_p7 = scmp.lt.s32.totalorder %s1403_s16, %s1398_s22 }
  0x47   : > { %p1402_p9 = pneg %p1401_p3  ;;  %p1406_p1 = por %p1405_p7, %p1404_p12 }
  0x49   : > { %p1407_p10 = pnand %p1406_p1, %p1402_p9 }
  0x4b   : > { %1410 = shalt.err (!%p1407_p10)
}
  0x4c   : > { %s1411_s14 = scalar_lea.vmem %s1671_s17, 1024  ;;  %s1507_s23 = smov [#allocation2]  }
  0x4d   : > { %p1412_p13 = scmp.ne.s32.totalorder %s1671_s17, %s1411_s14  ;;  %s1416_s2 = sshll.u32 %s1507_s23, 4  ;;  %s1417_s2 = int_to_ptr.vmem [resolvable:$false] %s1416_s2 }
  0x4e   : > { %s1418_s10 = scalar_lea.vmem %s1417_s2, 2048  ;;  %p1419_p3 = scmp.lt.s32.totalorder %s1671_s17, %s1417_s2 }
  0x4f   : > { %p1414_p6 = pnand %p1412_p13, %p1400_p5  ;;  %p1420_p0 = scmp.lt.s32.totalorder %s1418_s10, %s1411_s14 }
  0x51   : > { %p1415_p2 = pneg %p1414_p6  ;;  %p1421_p4 = por %p1420_p0, %p1419_p3 }
  0x53   : > { %p1422_p8 = pnand %p1421_p4, %p1415_p2 }
  0x55   : > { %1425 = shalt.err (!%p1422_p8)
}
  0x56   : > { %s1924_s22 = smov 8   ;;  %s1925_s11 = smov 128  }
  0x57   : > { %1193 = dma.hbm_to_vmem [thread:$0]  (!%p1667_p11), %s1665_s13, 1024, %s1671_s17, %s1673_s20, %s1925_s11, %s1925_s11, %s1924_s22  }
  0x58   : > { %p1926_p6 = scmp.ne.s32.totalorder %s1919_s9, 0 }
  0x59   : > { %s1700_s23 = sand.u32 (!%p1926_p6), 1, %s1490_s25   ;;  %p1927_p4 = scmp.ne.s32.totalorder (!%p1926_p6), %s1917_s30, 0 }
  0x5a   : > { %290 = sbr.rel (%p1926_p6) target bundleno = 881 (0x371), region = 48  ;;  %s1077_s2 = sshll.u32 (!%p1926_p6), %s1700_s23, 6 }
  0x5b   : > { %s293_s16 = scalar_lea.sflag (!%p1926_p6), [#allocation3], %s1700_s23  ;;  %s296_s19 = scalar_lea.vmem (!%p1926_p6), [#allocation2], %s1077_s2 }
  0x5f   : > { %1469 = dma.done.wait (%p1927_p4), %s293_s16, 1024  }
  0x60   : > { %1471 = vsyncadd (%p1927_p4), %s293_s16, 4294966272  ;;  %p1928_p8 = scmp.eq.s32.totalorder %s1573_s28, 0 }
  0x62   : > { %1473 = dma.done.wait (%p1928_p8), [#allocation6], 2064   ;;  %p1929_p0 = pmov %p1928_p8 }
  0x64   : > { %1475 = vsyncadd (%p1929_p0), [#allocation6], 4294965232  ;;  %p1930_p11 = pmov %p1929_p0 }
  0x65   : > { %p1931_p5 = pmov %p1929_p0 }
  0x66   : > { %1477 = dma.done.wait (%p1930_p11), [#allocation9], 2048  }
  0x67   : > { %1479 = vsyncadd (%p1931_p5), [#allocation9], 4294965248  ;;  %v1718_v0 = vld [vmem:[%s296_s19] sm:$0xff]  ;;  %v1720_v1 = vld [vmem:[%s296_s19 + $0x10] sm:$0xff]  ;;  %v1508_v56 = vmov 0   ;;  %s1835_s15 = scalar_lea.vmem [#allocation10], %s1077_s2 }
  0x68   : > { %350 = vadd.xlane.f32.xlu0 %v1718_v0  ;;  %354 = vadd.xlane.f32.xlu1 %v1720_v1  ;;  %v1724_v2 = vld [vmem:[%s296_s19 + $0x8] sm:$0xff]  ;;  %v1726_v3 = vld [vmem:[%s296_s19 + $0x18] sm:$0xff]  ;;  %v1728_v4 = vld [vmem:[%s296_s19 + $0x20] sm:$0xff]  ;;  %s1123_s14 = sshll.u32 %s1573_s28, 10  ;;  %s965_s10 = sshll.u32 %s1835_s15, 4  ;;  %s1857_s10 = int_to_ptr.vmem [resolvable:$true] %s965_s10 }
  0x69   : > { %v1730_v5 = vld [vmem:[%s296_s19 + $0x28] sm:$0xff]  ;;  %v1734_v6 = vld [vmem:[%s296_s19 + $0x30] sm:$0xff]  ;;  %v1736_v7 = vld [vmem:[%s296_s19 + $0x38] sm:$0xff]  ;;  %670 = vmatprep.mubr.bf16.mxu0 %v1508_v56  ;;  %s1855_s2 = scalar_lea.hbm %s1909_s7, %s1123_s14  ;;  %s952_s16 = scalar_lea.sflag [#allocation4], %s1700_s23 }
  0x6a   : > { %v1248_v40 = vld [vmem:[#allocation7 + $0x74] ss:$8 sps:$4 sm:$0xff]   ;;  %v1250_v41 = vld [vmem:[#allocation7 + $0x70] ss:$8 sps:$4 sm:$0xff]   ;;  %v1251_v42 = vld [vmem:[#allocation7 + $0x64] ss:$8 sps:$4 sm:$0xff]  }
  0x6b   : > { %638 = vmatprep.subr.bf16.mxu0 %v1248_v40  ;;  %v1253_v43 = vld [vmem:[#allocation7 + $0x60] ss:$8 sps:$4 sm:$0xff]   ;;  %v1254_v44 = vld [vmem:[#allocation7 + $0x54] ss:$8 sps:$4 sm:$0xff]   ;;  %v1256_v45 = vld [vmem:[#allocation7 + $0x50] ss:$8 sps:$4 sm:$0xff]  }
  0x6c   : > { %352 = vadd.xlane.f32.xlu0 %v1724_v2  ;;  %356 = vadd.xlane.f32.xlu1 %v1726_v3  ;;  %v1257_v46 = vld [vmem:[#allocation7 + $0x44] ss:$8 sps:$4 sm:$0xff]   ;;  %v1259_v47 = vld [vmem:[#allocation7 + $0x40] ss:$8 sps:$4 sm:$0xff]   ;;  %v1260_v48 = vld [vmem:[#allocation7 + $0x34] ss:$8 sps:$4 sm:$0xff]  }
  0x6d   : > { %639 = vmatpush1.bf16.msra.mxu0 %v1250_v41  ;;  %v1262_v49 = vld [vmem:[#allocation7 + $0x30] ss:$8 sps:$4 sm:$0xff]   ;;  %v1263_v50 = vld [vmem:[#allocation7 + $0x24] ss:$8 sps:$4 sm:$0xff]   ;;  %v1265_v51 = vld [vmem:[#allocation7 + $0x20] ss:$8 sps:$4 sm:$0xff]  }
  0x6e   : > { %640 = vmatprep.subr.bf16.mxu0 %v1251_v42  ;;  %v1266_v52 = vld [vmem:[#allocation7 + $0x14] ss:$8 sps:$4 sm:$0xff]   ;;  %v1268_v53 = vld [vmem:[#allocation7 + $0x10] ss:$8 sps:$4 sm:$0xff]   ;;  %v1269_v54 = vld [vmem:[#allocation7 + $0x4] ss:$8 sps:$4 sm:$0xff]  }
  0x6f   : > { %v1271_v55 = vld [vmem:[#allocation7] ss:$8 sps:$4 sm:$0xff]   ;;  %v1272_v57 = vld [vmem:[#allocation8 + $0x78] sm:$0xff]   ;;  %v1274_v59 = vld [vmem:[#allocation8 + $0x70] sm:$0xff]   ;;  %s1426_s19 = scalar_lea.vmem %s1857_s10, 1024  ;;  %p1932_p12 = scmp.ne.s32.totalorder %s1922_s29, 0 }
  0x70   : > { %358 = vadd.xlane.f32.xlu0 %v1728_v4  ;;  %360 = vadd.xlane.f32.xlu1 %v1730_v5  ;;  %v1273_v58 = vld [vmem:[#allocation8 + $0x38] sm:$0xff]   ;;  %v1275_v60 = vld [vmem:[#allocation8 + $0x30] sm:$0xff]   ;;  %v1276_v61 = vld [vmem:[#allocation8 + $0x68] sm:$0xff]   ;;  %p1427_p9 = scmp.ne.s32.totalorder %s1857_s10, %s1426_s19  ;;  %s1509_s28 = smov [#allocation10]  }
  0x71   : > { %641 = vmatpush1.bf16.msra.mxu0 %v1253_v43  ;;  %1124 = vmatprep.subr.bf16.mxu1 %v1272_v57  ;;  %v1277_v62 = vld [vmem:[#allocation8 + $0x28] sm:$0xff]   ;;  %v1278_v63 = vld [vmem:[#allocation8 + $0x60] sm:$0xff]   ;;  %s1430_s30 = sshll.u32 %s1509_s28, 4  ;;  %s1431_s30 = int_to_ptr.vmem [resolvable:$false] %s1430_s30 }
  0x72   : > { %642 = vmatprep.subr.bf16.mxu0 %v1254_v44  ;;  %1125 = vmatpush3.bf16.msra.mxu1 %v1273_v58  ;;  %p1428_p7 = pnand %p1427_p9, %p1932_p12  ;;  %s1432_s9 = scalar_lea.vmem %s1431_s30, 2048 }
  0x73   : > { %1126 = vmatprep.subr.bf16.mxu1 %v1274_v59  ;;  %p1433_p10 = scmp.lt.s32.totalorder %s1857_s10, %s1431_s30  ;;  %p1434_p13 = scmp.lt.s32.totalorder %s1432_s9, %s1426_s19 }
  0x74   : > { %362 = vadd.xlane.f32.xlu0 %v1734_v6  ;;  %364 = vadd.xlane.f32.xlu1 %v1736_v7  ;;  %p1429_p1 = pneg %p1428_p7 }
  0x75   : > { %643 = vmatpush1.bf16.msra.mxu0 %v1256_v45  ;;  %p1435_p2 = por %p1434_p13, %p1433_p10 }
  0x76   : > { %644 = vmatprep.subr.bf16.mxu0 %v1257_v46  ;;  %1127 = vmatpush3.bf16.msra.mxu1 %v1275_v60 }
  0x77   : > { %1128 = vmatprep.subr.bf16.mxu1 %v1276_v61  ;;  %p1436_p3 = pnand %p1435_p2, %p1429_p1 }
  0x79   : > { %645 = vmatpush1.bf16.msra.mxu0 %v1259_v47 }
  0x7a   : > { %646 = vmatprep.subr.bf16.mxu0 %v1260_v48  ;;  %1129 = vmatpush3.bf16.msra.mxu1 %v1277_v62 }
  0x7b   : > { %1130 = vmatprep.subr.bf16.mxu1 %v1278_v63 }
  0x7d   : > { %647 = vmatpush1.bf16.msra.mxu0 %v1262_v49 }
  0x7e   : > { %648 = vmatprep.subr.bf16.mxu0 %v1263_v50 }
  0x81   : > { %649 = vmatpush1.bf16.msra.mxu0 %v1265_v51 }
  0x82   : > { %650 = vmatprep.subr.bf16.mxu0 %v1266_v52 }
  0x85   : > { %651 = vmatpush1.bf16.msra.mxu0 %v1268_v53 }
  0x86   : > { %652 = vmatprep.subr.bf16.mxu0 %v1269_v54 }
  0x89   : > { %653 = vmatpush1.bf16.msra.mxu0 %v1271_v55 }
  0xf1   : > { %v351_v8 = vpop.xlane.xlu0 %350  ;;  %v355_v9 = vpop.xlane.xlu1 %354 }
  0xf2   : > { %v367_v10 = vmul.f32 0.0078125, %v351_v8  ;;  %v369_v11 = vmul.f32 0.0078125, %v355_v9  ;;  %v1279_v8 = vld [vmem:[#allocation8 + $0x20] sm:$0xff]   ;;  %v1280_v9 = vld [vmem:[#allocation8 + $0x58] sm:$0xff]  }
  0xf3   : > { %1131 = vmatpush3.bf16.msra.mxu1 %v1279_v8 }
  0xf4   : > { %v1743_v12 = vsub.f32 %v1718_v0, %v367_v10  ;;  %v1746_v13 = vsub.f32 %v1720_v1, %v369_v11  ;;  %v1281_v10 = vld [vmem:[#allocation8 + $0x18] sm:$0xff]   ;;  %1132 = vmatprep.subr.bf16.mxu1 %v1280_v9 }
  0xf5   : > { %v353_v14 = vpop.xlane.xlu0 %352  ;;  %v357_v15 = vpop.xlane.xlu1 %356 }
  0xf6   : > { %v368_v16 = vmul.f32 0.0078125, %v353_v14  ;;  %v383_v17 = vmul.f32 %v1743_v12, %v1743_v12  ;;  %v370_v18 = vmul.f32 0.0078125, %v357_v15  ;;  %v385_v20 = vmul.f32 %v1746_v13, %v1746_v13 }
  0xf7   : > { %1133 = vmatpush3.bf16.msra.mxu1 %v1281_v10 }
  0xf8   : > { %v1751_v19 = vsub.f32 %v1724_v2, %v368_v16  ;;  %391 = vadd.xlane.f32.xlu0 %v383_v17  ;;  %v1756_v21 = vsub.f32 %v1726_v3, %v370_v18 }
  0xf9   : > { %v359_v22 = vpop.xlane.xlu0 %358  ;;  %v361_v23 = vpop.xlane.xlu1 %360 }
  0xfa   : > { %v371_v24 = vmul.f32 0.0078125, %v359_v22  ;;  %v384_v25 = vmul.f32 %v1751_v19, %v1751_v19  ;;  %v372_v26 = vmul.f32 0.0078125, %v361_v23  ;;  %v386_v29 = vmul.f32 %v1756_v21, %v1756_v21 }
  0xfc   : > { %v1761_v27 = vsub.f32 %v1728_v4, %v371_v24  ;;  %395 = vadd.xlane.f32.xlu0 %v385_v20  ;;  %393 = vadd.xlane.f32.xlu1 %v384_v25  ;;  %v1764_v28 = vsub.f32 %v1730_v5, %v372_v26 }
  0xfd   : > { %v363_v30 = vpop.xlane.xlu0 %362  ;;  %v365_v31 = vpop.xlane.xlu1 %364 }
  0xfe   : > { %v373_v32 = vmul.f32 0.0078125, %v363_v30  ;;  %v387_v33 = vmul.f32 %v1761_v27, %v1761_v27  ;;  %v374_v34 = vmul.f32 0.0078125, %v365_v31  ;;  %v388_v36 = vmul.f32 %v1764_v28, %v1764_v28 }
 0x100   : > { %v1771_v35 = vsub.f32 %v1734_v6, %v373_v32  ;;  %397 = vadd.xlane.f32.xlu1 %v386_v29  ;;  %399 = vadd.xlane.f32.xlu0 %v387_v33  ;;  %v1776_v37 = vsub.f32 %v1736_v7, %v374_v34 }
 0x102   : > { %v389_v38 = vmul.f32 %v1771_v35, %v1771_v35  ;;  %v390_v39 = vmul.f32 %v1776_v37, %v1776_v37 }
 0x104   : > { %401 = vadd.xlane.f32.xlu1 %v388_v36  ;;  %403 = vadd.xlane.f32.xlu0 %v389_v38 }
 0x108   : > { %405 = vadd.xlane.f32.xlu1 %v390_v39 }
 0x181   : > { %v392_v11 = vpop.xlane.xlu0 %391 }
 0x182   : > { %v408_v14 = vmul.f32 0.007874016, %v392_v11 }
 0x184   : > { %1288 = vrsqrt.f32 %v408_v14  ;;  %vm418_vm0 = vcmp.eq.f32.partialorder %v408_v14, inf  ;;  %v421_v36 = vand.u32 2147483648, %v408_v14  ;;  %vm420_vm1 = vcmp.eq.f32.partialorder %v408_v14, 0.0 }
 0x185   : > { %v394_v15 = vpop.xlane.xlu1 %393  ;;  %v396_v16 = vpop.xlane.xlu0 %395 }
 0x186   : > { %v409_v17 = vmul.f32 0.007874016, %v394_v15  ;;  %v410_v18 = vmul.f32 0.007874016, %v396_v16 }
 0x188   : > { %1290 = vrsqrt.f32 %v409_v17  ;;  %vm425_vm2 = vcmp.eq.f32.partialorder %v409_v17, inf  ;;  %vm427_vm3 = vcmp.eq.f32.partialorder %v409_v17, 0.0  ;;  %v428_v44 = vand.u32 2147483648, %v409_v17 }
 0x189   : > { %1292 = vrsqrt.f32 %v410_v18  ;;  %v398_v20 = vpop.xlane.xlu1 %397  ;;  %v400_v22 = vpop.xlane.xlu0 %399  ;;  %vm432_vm4 = vcmp.eq.f32.partialorder %v410_v18, inf  ;;  %vm434_vm5 = vcmp.eq.f32.partialorder %v410_v18, 0.0  ;;  %v435_v47 = vand.u32 2147483648, %v410_v18 }
 0x18a   : > { %v411_v23 = vmul.f32 0.007874016, %v398_v20  ;;  %v412_v24 = vmul.f32 0.007874016, %v400_v22 }
 0x18c   : > { %1294 = vrsqrt.f32 %v411_v23  ;;  %vm439_vm6 = vcmp.eq.f32.partialorder %v411_v23, inf  ;;  %vm441_vm7 = vcmp.eq.f32.partialorder %v411_v23, 0.0  ;;  %v442_v55 = vand.u32 2147483648, %v411_v23 }
 0x18d   : > { %1296 = vrsqrt.f32 %v412_v24  ;;  %v402_v25 = vpop.xlane.xlu1 %401  ;;  %v404_v26 = vpop.xlane.xlu0 %403  ;;  %vm446_vm8 = vcmp.eq.f32.partialorder %v412_v24, inf  ;;  %vm448_vm9 = vcmp.eq.f32.partialorder %v412_v24, 0.0  ;;  %v449_v60 = vand.u32 2147483648, %v412_v24 }
 0x18e   : > { %v1783_v29 = vmul.f32 0.007874016, %v402_v25  ;;  %v1785_v30 = vmul.f32 0.007874016, %v404_v26 }
 0x190   : > { %1298 = vrsqrt.f32 %v1783_v29  ;;  %vm453_vm10 = vcmp.eq.f32.partialorder %v1783_v29, inf  ;;  %vm460_vm11 = vcmp.eq.f32.partialorder %v1785_v30, inf  ;;  %v456_v16 = vand.u32 2147483648, %v1783_v29 }
 0x191   : > { %v1289_v31 = vpop.eup %1288  ;;  %1300 = vrsqrt.f32 %v1785_v30  ;;  %v406_v32 = vpop.xlane.xlu1 %405  ;;  %vm462_vm12 = vcmp.eq.f32.partialorder %v1785_v30, 0.0  ;;  %vm455_vm13 = vcmp.eq.f32.partialorder %v1783_v29, 0.0 }
 0x192   : > { %v417_v33 = vmul.f32 %v1289_v31, %v408_v14  ;;  %v1789_v34 = vmul.f32 0.007874016, %v406_v32  ;;  %v1082_v31 = vld [vmem:[%s1903_s1] ss:$0 sm:$0xff] }
 0x194   : > { %v419_v38 = vsel %vm418_vm0, %v408_v14, %v417_v33  ;;  %1302 = vrsqrt.f32 %v1789_v34  ;;  %v463_v14 = vand.u32 2147483648, %v1785_v30  ;;  %vm467_vm14 = vcmp.eq.f32.partialorder %v1789_v34, inf }
 0x195   : > { %v1291_v39 = vpop.eup %1290  ;;  %v422_v40 = vsel %vm420_vm1, %v421_v36, %v419_v38  ;;  %vm469_vm15 = vcmp.eq.f32.partialorder %v1789_v34, 0.0  ;;  %v495_v38 = vmul.f32 %v1082_v31, %v1743_v12  ;;  %v499_v12 = vmul.f32 %v1082_v31, %v1761_v27 }
 0x196   : > { %v1293_v41 = vpop.eup %1292  ;;  %v472_v42 = vadd.f32 1e-06, %v422_v40  ;;  %v424_v43 = vmul.f32 %v1291_v39, %v409_v17  ;;  %v496_v40 = vmul.f32 %v1082_v31, %v1751_v19  ;;  %v500_v19 = vmul.f32 %v1082_v31, %v1764_v28 }
 0x197   : > { %v431_v45 = vmul.f32 %v1293_v41, %v410_v18 }
 0x198   : > { %1304 = vrcp.f32 %v472_v42  ;;  %v426_v46 = vsel %vm425_vm2, %v409_v17, %v424_v43  ;;  %v1083_v43 = vld [vmem:[#allocation5] ss:$0 sm:$0xff] }
 0x199   : > { %v1295_v48 = vpop.eup %1294  ;;  %v429_v49 = vsel %vm427_vm3, %v428_v44, %v426_v46  ;;  %v433_v50 = vsel %vm432_vm4, %v410_v18, %v431_v45  ;;  %v497_v45 = vmul.f32 %v1082_v31, %v1746_v13 }
 0x19a   : > { %v1297_v51 = vpop.eup %1296  ;;  %v473_v52 = vadd.f32 1e-06, %v429_v49  ;;  %v436_v53 = vsel %vm434_vm5, %v435_v47, %v433_v50  ;;  %v438_v54 = vmul.f32 %v1295_v48, %v411_v23  ;;  %v498_v47 = vmul.f32 %v1082_v31, %v1756_v21 }
 0x19b   : > { %v474_v57 = vadd.f32 1e-06, %v436_v53  ;;  %v445_v58 = vmul.f32 %v1297_v51, %v412_v24  ;;  %v501_v21 = vmul.f32 %v1082_v31, %v1771_v35  ;;  %v1282_v35 = vld [vmem:[#allocation8 + $0x50] sm:$0xff]  }
 0x19c   : > { %1306 = vrcp.f32 %v473_v52  ;;  %v440_v59 = vsel %vm439_vm6, %v411_v23, %v438_v54  ;;  %1134 = vmatprep.subr.bf16.mxu1 %v1282_v35 }
 0x19d   : > { %v1299_v61 = vpop.eup %1298  ;;  %1308 = vrcp.f32 %v474_v57  ;;  %v443_v62 = vsel %vm441_vm7, %v442_v55, %v440_v59  ;;  %v447_v63 = vsel %vm446_vm8, %v412_v24, %v445_v58 }
 0x19e   : > { %v1301_v8 = vpop.eup %1300  ;;  %v475_v9 = vadd.f32 1e-06, %v443_v62  ;;  %v450_v10 = vsel %vm448_vm9, %v449_v60, %v447_v63  ;;  %v452_v11 = vmul.f32 %v1299_v61, %v1783_v29  ;;  %v502_v61 = vmul.f32 %v1082_v31, %v1776_v37  ;;  %v1284_v37 = vld [vmem:[#allocation8 + $0x48] sm:$0xff]  }
 0x19f   : > { %v476_v15 = vadd.f32 1e-06, %v450_v10  ;;  %v459_v17 = vmul.f32 %v1301_v8, %v1785_v30 }
 0x1a0   : > { %1310 = vrcp.f32 %v475_v9  ;;  %v454_v18 = vsel %vm453_vm10, %v1783_v29, %v452_v11  ;;  %v470_v29 = vand.u32 2147483648, %v1789_v34 }
 0x1a1   : > { %v1303_v20 = vpop.eup %1302  ;;  %1312 = vrcp.f32 %v476_v15  ;;  %v457_v22 = vsel %vm455_vm13, %v456_v16, %v454_v18  ;;  %v461_v23 = vsel %vm460_vm11, %v1785_v30, %v459_v17  ;;  %v1283_v15 = vld [vmem:[#allocation8 + $0x10] sm:$0xff]   ;;  %v1285_v16 = vld [vmem:[#allocation8 + $0x8] sm:$0xff]   ;;  %v1286_v17 = vld [vmem:[#allocation8 + $0x40] sm:$0xff]  }
 0x1a2   : > { %v477_v24 = vadd.f32 1e-06, %v457_v22  ;;  %v464_v25 = vsel %vm462_vm12, %v463_v14, %v461_v23  ;;  %v466_v26 = vmul.f32 %v1303_v20, %v1789_v34  ;;  %1135 = vmatpush3.bf16.msra.mxu1 %v1283_v15  ;;  %v1287_v18 = vld [vmem:[#allocation8] sm:$0xff]   ;;  %v548_v20 = vlaneseq }
 0x1a3   : > { %v478_v32 = vadd.f32 1e-06, %v464_v25  ;;  %1136 = vmatprep.subr.bf16.mxu1 %v1284_v37 }
 0x1a4   : > { %1314 = vrcp.f32 %v477_v24  ;;  %v468_v33 = vsel %vm467_vm14, %v1789_v34, %v466_v26  ;;  %v549_v22 = vshrl.u32 %v548_v20, 7 }
 0x1a5   : > { %v1305_v36 = vpop.eup %1304  ;;  %1316 = vrcp.f32 %v478_v32  ;;  %v471_v30 = vsel %vm469_vm15, %v470_v29, %v468_v33 }
 0x1a6   : > { %v479_v39 = vadd.f32 1e-06, %v471_v30  ;;  %v503_v41 = vmul.f32 %v1305_v36, %v495_v38  ;;  %1137 = vmatpush3.bf16.msra.mxu1 %v1285_v16  ;;  %v554_v23 = vsub.s32 1, %v549_v22  ;;  %v550_v24 = vsub.s32 0, %v549_v22 }
 0x1a7   : > { %1138 = vmatprep.subr.bf16.mxu1 %v1286_v17 }
 0x1a8   : > { %1318 = vrcp.f32 %v479_v39  ;;  %v518_v48 = vadd.f32 %v1083_v43, %v503_v41 }
 0x1a9   : > { %v1307_v42 = vpop.eup %1306 }
 0x1aa   : > { %v1309_v44 = vpop.eup %1308  ;;  %v504_v46 = vmul.f32 %v1307_v42, %v496_v40  ;;  %1139 = vmatpush3.bf16.msra.mxu1 %v1287_v18 }
 0x1ab   : > { %v505_v49 = vmul.f32 %v1309_v44, %v497_v45 }
 0x1ac   : > { %v519_v34 = vadd.f32 %v1083_v43, %v504_v46 }
 0x1ad   : > { %v1311_v50 = vpop.eup %1310  ;;  %v520_v54 = vadd.f32 %v1083_v43, %v505_v49 }
 0x1ae   : > { %v1313_v51 = vpop.eup %1312  ;;  %v526_v52 = vpack.c.bf16 %v519_v34, %v518_v48  ;;  %v506_v53 = vmul.f32 %v1311_v50, %v498_v47 }
 0x1af   : > { %v507_v57 = vmul.f32 %v1313_v51, %v499_v12 }
 0x1b0   : > { %671 = vmatmul.mubr.bf16.vlgmr.msra.gmra.mxu0 %v526_v52  ;;  %v521_v55 = vadd.f32 %v1083_v43, %v506_v53 }
 0x1b1   : > { %v1315_v58 = vpop.eup %1314  ;;  %680 = vmatprep.mubr.bf16.mxu0 %v1508_v56  ;;  %v522_v62 = vadd.f32 %v1083_v43, %v507_v57 }
 0x1b2   : > { %v1317_v13 = vpop.eup %1316  ;;  %v527_v59 = vpack.c.bf16 %v521_v55, %v520_v54  ;;  %v508_v60 = vmul.f32 %v1315_v58, %v500_v19 }
 0x1b3   : > { %v509_v63 = vmul.f32 %v1317_v13, %v501_v21 }
 0x1b4   : > { %v523_v27 = vadd.f32 %v1083_v43, %v508_v60 }
 0x1b5   : > { %v1319_v8 = vpop.eup %1318  ;;  %v524_v10 = vadd.f32 %v1083_v43, %v509_v63 }
 0x1b6   : > { %v528_v9 = vpack.c.bf16 %v523_v27, %v522_v62  ;;  %v510_v28 = vmul.f32 %v1319_v8, %v502_v61 }
 0x1b8   : > { %681 = vmatmul.mubr.bf16.gmra.mxu0 %v527_v59  ;;  %v525_v11 = vadd.f32 %v1083_v43, %v510_v28 }
 0x1b9   : > { %690 = vmatprep.mubr.bf16.mxu0 %v1508_v56 }
 0x1ba   : > { %v529_v14 = vpack.c.bf16 %v525_v11, %v524_v10 }
 0x1c0   : > { %691 = vmatmul.mubr.bf16.gmra.mxu0 %v528_v9 }
 0x1c1   : > { %700 = vmatprep.mubr.bf16.mxu0 %v1508_v56  ;;  %v546_v56 = vld [vmem:[%s1906_s4] sm:$0x3] }
 0x1c2   : > { %v555_v26 = vrot.slane %v546_v56, %v554_v23  ;;  %v551_v31 = vrot.slane %v546_v56, %v550_v24 }
 0x1c8   : > { %701 = vmatmul.mubr.bf16.gmra.mxu0 %v529_v14 }
 0x270   : > { %v672_v25 = vpop.f32.mrf.mxu0 }
 0x271   : > { %v673_v30 = vadd.f32 %v672_v25, %v551_v31 }
 0x272   : > { %v674_v32 = vpop.f32.mrf.mxu0 }
 0x273   : > { %v675_v33 = vadd.f32 %v674_v32, %v555_v26  ;;  %v711_v44 = vmax.f32 %v673_v30, 0.0 }
 0x274   : > { %v676_v29 = vpop.f32.mrf.mxu0 }
 0x275   : > { %v677_v36 = vadd.f32 %v676_v29, %v551_v31  ;;  %v712_v42 = vmax.f32 %v675_v33, 0.0  ;;  %v1100_v33 = vld [vmem:[%s1908_s6] ss:$0 sm:$0xff] }
 0x276   : > { %v678_v38 = vpop.f32.mrf.mxu0 }
 0x277   : > { %v679_v39 = vadd.f32 %v678_v38, %v555_v26  ;;  %v713_v40 = vmax.f32 %v677_v36, 0.0 }
 0x278   : > { %v682_v41 = vpop.f32.mrf.mxu0 }
 0x279   : > { %v714_v43 = vmax.f32 %v679_v39, 0.0  ;;  %v727_v47 = vpack.c.bf16 %v713_v40, %v711_v44  ;;  %v683_v50 = vadd.f32 %v682_v41, %v551_v31 }
 0x27a   : > { %v684_v45 = vpop.f32.mrf.mxu0 }
 0x27b   : > { %v728_v46 = vpack.c.bf16 %v714_v43, %v712_v42  ;;  %v685_v34 = vadd.f32 %v684_v45, %v555_v26  ;;  %v715_v55 = vmax.f32 %v683_v50, 0.0 }
 0x27c   : > { %v686_v48 = vpop.f32.mrf.mxu0 }
 0x27d   : > { %v687_v49 = vadd.f32 %v686_v48, %v551_v31  ;;  %902 = vmatprep.mubr.bf16.mxu1 %v728_v46  ;;  %v716_v19 = vmax.f32 %v685_v34, 0.0 }
 0x27e   : > { %v688_v51 = vpop.f32.mrf.mxu0  ;;  %903 = vmatmul.mubr.bf16.vlgmr.msra.gmra.mxu1 %v727_v47 }
 0x27f   : > { %v689_v12 = vadd.f32 %v688_v51, %v555_v26  ;;  %v717_v52 = vmax.f32 %v687_v49, 0.0 }
 0x280   : > { %v692_v53 = vpop.f32.mrf.mxu0 }
 0x281   : > { %v718_v54 = vmax.f32 %v689_v12, 0.0  ;;  %v729_v13 = vpack.c.bf16 %v717_v52, %v715_v55  ;;  %v693_v61 = vadd.f32 %v692_v53, %v551_v31 }
 0x282   : > { %v694_v57 = vpop.f32.mrf.mxu0 }
 0x283   : > { %v730_v58 = vpack.c.bf16 %v718_v54, %v716_v19  ;;  %v695_v59 = vadd.f32 %v694_v57, %v555_v26  ;;  %v719_v10 = vmax.f32 %v693_v61, 0.0 }
 0x284   : > { %v696_v21 = vpop.f32.mrf.mxu0 }
 0x285   : > { %v697_v60 = vadd.f32 %v696_v21, %v551_v31  ;;  %910 = vmatprep.mubr.bf16.mxu1 %v730_v58  ;;  %v720_v9 = vmax.f32 %v695_v59, 0.0 }
 0x286   : > { %v698_v62 = vpop.f32.mrf.mxu0  ;;  %911 = vmatmul.mubr.bf16.gmra.mxu1 %v729_v13 }
 0x287   : > { %v699_v27 = vadd.f32 %v698_v62, %v555_v26  ;;  %v721_v63 = vmax.f32 %v697_v60, 0.0 }
 0x288   : > { %v702_v8 = vpop.f32.mrf.mxu0 }
 0x289   : > { %v722_v28 = vmax.f32 %v699_v27, 0.0  ;;  %v731_v35 = vpack.c.bf16 %v721_v63, %v719_v10  ;;  %v703_v17 = vadd.f32 %v702_v8, %v551_v31 }
 0x28a   : > { %v704_v11 = vpop.f32.mrf.mxu0 }
 0x28b   : > { %v732_v14 = vpack.c.bf16 %v722_v28, %v720_v9  ;;  %v705_v37 = vadd.f32 %v704_v11, %v555_v26  ;;  %v723_v56 = vmax.f32 %v703_v17, 0.0 }
 0x28c   : > { %v706_v15 = vpop.f32.mrf.mxu0 }
 0x28d   : > { %v707_v16 = vadd.f32 %v706_v15, %v551_v31  ;;  %918 = vmatprep.mubr.bf16.mxu1 %v732_v14  ;;  %v724_v23 = vmax.f32 %v705_v37, 0.0 }
 0x28e   : > { %v708_v18 = vpop.f32.mrf.mxu0  ;;  %919 = vmatmul.mubr.bf16.gmra.mxu1 %v731_v35 }
 0x28f   : > { %v709_v20 = vadd.f32 %v708_v18, %v555_v26  ;;  %v725_v22 = vmax.f32 %v707_v16, 0.0 }
 0x291   : > { %v726_v24 = vmax.f32 %v709_v20, 0.0  ;;  %v733_v32 = vpack.c.bf16 %v725_v22, %v723_v56 }
 0x293   : > { %v734_v25 = vpack.c.bf16 %v726_v24, %v724_v23 }
 0x295   : > { %926 = vmatprep.mubr.bf16.mxu1 %v734_v25 }
 0x296   : > { %927 = vmatmul.mubr.bf16.gmra.mxu1 %v733_v32 }
 0x33e   : > { %v1140_v29 = vpop.f32.mrf.mxu1 }
 0x340   : > { %v1141_v36 = vpop.f32.mrf.mxu1 }
 0x341   : > { %v1142_v30 = vadd.f32 %v1141_v36, %v1140_v29 }
 0x342   : > { %v1143_v31 = vpop.f32.mrf.mxu1 }
 0x343   : > { %v905_v38 = vadd.f32 %v1142_v30, %v1100_v33 }
 0x344   : > { %v1144_v39 = vpop.f32.mrf.mxu1 }
 0x345   : > { %v935_v26 = vadd.f32 %v905_v38, %v1718_v0  ;;  %v1145_v40 = vadd.f32 %v1144_v39, %v1143_v31 }
 0x346   : > { %v1146_v41 = vpop.f32.mrf.mxu1 }
 0x347   : > { %943 = vst [vmem:[%s1835_s15] sm:$0xff] %v935_v26  ;;  %v908_v42 = vadd.f32 %v1145_v40, %v1100_v33 }
 0x348   : > { %v1147_v43 = vpop.f32.mrf.mxu1 }
 0x349   : > { %v936_v44 = vadd.f32 %v908_v42, %v1724_v2  ;;  %v1148_v45 = vadd.f32 %v1147_v43, %v1146_v41 }
 0x34a   : > { %v1149_v46 = vpop.f32.mrf.mxu1 }
 0x34b   : > { %944 = vst [vmem:[%s1835_s15 + $0x8] sm:$0xff] %v936_v44  ;;  %v913_v47 = vadd.f32 %v1148_v45, %v1100_v33 }
 0x34c   : > { %v1150_v48 = vpop.f32.mrf.mxu1 }
 0x34d   : > { %v937_v0 = vadd.f32 %v913_v47, %v1720_v1  ;;  %v1151_v34 = vadd.f32 %v1150_v48, %v1149_v46 }
 0x34e   : > { %v1152_v49 = vpop.f32.mrf.mxu1 }
 0x34f   : > { %945 = vst [vmem:[%s1835_s15 + $0x10] sm:$0xff] %v937_v0  ;;  %v916_v50 = vadd.f32 %v1151_v34, %v1100_v33 }
 0x350   : > { %v1153_v51 = vpop.f32.mrf.mxu1 }
 0x351   : > { %v938_v12 = vadd.f32 %v916_v50, %v1726_v3  ;;  %v1154_v52 = vadd.f32 %v1153_v51, %v1152_v49 }
 0x352   : > { %v1155_v53 = vpop.f32.mrf.mxu1 }
 0x353   : > { %946 = vst [vmem:[%s1835_s15 + $0x18] sm:$0xff] %v938_v12  ;;  %v921_v2 = vadd.f32 %v1154_v52, %v1100_v33 }
 0x354   : > { %v1156_v19 = vpop.f32.mrf.mxu1 }
 0x355   : > { %v939_v54 = vadd.f32 %v921_v2, %v1728_v4  ;;  %v1157_v55 = vadd.f32 %v1156_v19, %v1155_v53 }
 0x356   : > { %v1158_v1 = vpop.f32.mrf.mxu1 }
 0x357   : > { %947 = vst [vmem:[%s1835_s15 + $0x20] sm:$0xff] %v939_v54  ;;  %v924_v57 = vadd.f32 %v1157_v55, %v1100_v33 }
 0x358   : > { %v1159_v58 = vpop.f32.mrf.mxu1 }
 0x359   : > { %v940_v13 = vadd.f32 %v924_v57, %v1730_v5  ;;  %v1160_v3 = vadd.f32 %v1159_v58, %v1158_v1 }
 0x35a   : > { %v1161_v21 = vpop.f32.mrf.mxu1 }
 0x35b   : > { %948 = vst [vmem:[%s1835_s15 + $0x28] sm:$0xff] %v940_v13  ;;  %v929_v59 = vadd.f32 %v1160_v3, %v1100_v33 }
 0x35c   : > { %v1162_v60 = vpop.f32.mrf.mxu1 }
 0x35d   : > { %v941_v61 = vadd.f32 %v929_v59, %v1734_v6  ;;  %v1163_v62 = vadd.f32 %v1162_v60, %v1161_v21 }
 0x35f   : > { %949 = vst [vmem:[%s1835_s15 + $0x30] sm:$0xff] %v941_v61  ;;  %v932_v4 = vadd.f32 %v1163_v62, %v1100_v33 }
 0x361   : > { %v942_v5 = vadd.f32 %v932_v4, %v1736_v7 }
 0x363   : > { %950 = vst [vmem:[%s1835_s15 + $0x38] sm:$0xff] %v942_v5 }
 0x364   : > { %1439 = shalt.err (!%p1436_p3)
}
 0x365   : > { %s1440_s13 = scalar_lea.hbm %s1855_s2, 1024  ;;  %s1444_s12 = scalar_lea.hbm %s1909_s7, 2048 }
 0x366   : > { %p1441_p6 = scmp.ne.s32.totalorder %s1855_s2, %s1440_s13  ;;  %p1445_p0 = scmp.lt.s32.totalorder %s1855_s2, %s1909_s7 }
 0x367   : > { %p1446_p11 = scmp.lt.s32.totalorder %s1444_s12, %s1440_s13 }
 0x368   : > { %p1442_p4 = pnand %p1441_p6, %p1932_p12 }
 0x369   : > { %p1447_p5 = por %p1446_p11, %p1445_p0 }
 0x36a   : > { %p1443_p8 = pneg %p1442_p4 }
 0x36c   : > { %p1448_p9 = pnand %p1447_p5, %p1443_p8 }
 0x36e   : > { %1451 = shalt.err (!%p1448_p9)
}
 0x36f   : > { %s1510_s22 = smov 128   ;;  %s1511_s11 = smov 8  }
 0x370   : > { %1178 = dma.vmem_to_hbm [thread:$0]  (%p1932_p12), %s1857_s10, 1024, %s1855_s2, %s952_s16, %s1510_s22, %s1510_s22, %s1511_s11  }
 0x371 PF: > { %s980_s19 = sand.u32 1, %s1486_s24   ;;  %p1933_p7 = scmp.ne.s32.totalorder %s1918_s8, 0 }
 0x372   : > { %p1934_p1 = scmp.ge.s32.totalorder %s1498_s27, 2  ;;  %s981_s28 = scalar_lea.sflag [#allocation4], %s980_s19 }
 0x374   : > { %p1195_p10 = pnand %p1934_p1, %p1933_p7 }
 0x376   : > { %p1196_p13 = pneg %p1195_p10 }
 0x378   : > { %1481 = dma.done.wait (%p1196_p13), %s981_s28, 1024  }
 0x379   : > { %1483 = vsyncadd (%p1196_p13), %s981_s28, 4294966272  ;;  %p22_p2 = scmp.ge.s32.totalorder %s1642_s18, 4   ;;  %s1935_s24 = smov %s1490_s25 }
 0x37a   : > { %s1936_s25 = smov %s1494_s26  ;;  %s1937_s26 = smov %s1652_s21 }
 0x37b   : > { %s1938_s27 = smov %s1642_s18  ;;  %24 = sbr.rel (!%p22_p2) target bundleno = 9 (0x9), region = 105 }
 0x380   :  { %986 = vsyncpa [#allocation3], 1 }
 0x381   :  { %988 = vsyncpa [#allocation3 + $0x1], 1 }
 0x382   :  { %989 = vsyncpa [#allocation6], 1 }
 0x383   :  { %990 = vsyncpa [#allocation9], 1 }
 0x384   :  { %991 = vsyncpa [#allocation4], 1 }
 0x385   :  { %993 = vsyncpa [#allocation4 + $0x1], 1 }

</bundles_post_ra>
